<compile_context>
chip_gen: v6e
topology: v6e:2x2x1
jax: 0.10.0
libtpu: 0.0.40
codegen_flags: <defaults>
</compile_context>

<pallas_src>
import jax
import jax.numpy as jnp
from jax.experimental import pallas as pl
from jax.experimental.pallas import tpu as pltpu

LEN_OUTPUT_BRAKE = 2
LEN_OUTPUT_GAS = 2
LEN_OUTPUT_STEER = 3
LEN_INPUT = 595

K_PAD = 640                       # LEN_INPUT zero-padded to a multiple of 128 lanes
TAIL_WIDTH = 128                  # fc5..fc8 + fused head run in 128-lane padded space
NUM_HEAD_LANES = LEN_OUTPUT_GAS + LEN_OUTPUT_BRAKE + LEN_OUTPUT_STEER  # 7

# SharedNet layer sizes (in, out)
SHARED_DIMS = [
    (LEN_INPUT, 512),
    (512, 512),
    (512, 256),
    (256, 128),
    (128, 64),
    (64, 32),
    (32, 16),
    (16, 8),
]
HEAD_DIMS = [
    (8, LEN_OUTPUT_GAS),
    (8, LEN_OUTPUT_BRAKE),
    (8, LEN_OUTPUT_STEER),
]
BN_EPS = 1e-5

# Per-row matmul MACs / resident weight bytes (padded shapes actually executed).
_MACS_PER_ROW = (K_PAD * 512 + 512 * 512 + 512 * 256 + 256 * 128
                 + 4 * TAIL_WIDTH * TAIL_WIDTH + TAIL_WIDTH * TAIL_WIDTH)
_WEIGHT_BYTES = 2 * (K_PAD * 512 + 512 * 512 + 512 * 256 + 256 * 128
                     + 5 * TAIL_WIDTH * TAIL_WIDTH) + 16 * 512 * 4


def _round_up(n, m):
    return ((n + m - 1) // m) * m


def mainnet_kernel(x_ref, w1_ref, w2_ref, w3_ref, w4_ref, wtail_ref, b_ref, out_ref):
    f32, bf16 = jnp.float32, jnp.bfloat16

    def linear_relu(h, w_bf16, bias_row, width):
        # bf16 x bf16 -> f32 accumulation on the MXU; bias add + ReLU in f32.
        # width is always a multiple of 128 -> clean lane-aligned bias slice.
        b = b_ref[bias_row:bias_row + 1, 0:width]
        z = jnp.dot(h.astype(bf16), w_bf16, preferred_element_type=f32) + b
        return jnp.maximum(z, 0.0)

    h = x_ref[...]                                           # (TB, 640) bf16
    h = linear_relu(h, w1_ref[...], 0, 512)                  # fc1
    h = linear_relu(h, w2_ref[...], 1, 512)                  # fc2 (+folded bn2)
    h = linear_relu(h, w3_ref[...], 2, 256)                  # fc3 (+folded bn3)
    h = linear_relu(h, w4_ref[...], 3, 128)                  # fc4 (+folded bn4)
    for t in range(4):                                       # fc5..fc8, 128-lane padded
        w = wtail_ref[t * TAIL_WIDTH:(t + 1) * TAIL_WIDTH, :]
        h = linear_relu(h, w, 4 + t, TAIL_WIDTH)

    # Fused heads: gas|brake|steer packed in lanes 0:7 of a single 8->128 matmul.
    wh = wtail_ref[4 * TAIL_WIDTH:5 * TAIL_WIDTH, :]
    z = (jnp.dot(h.astype(bf16), wh, preferred_element_type=f32)
         + b_ref[8:9, 0:TAIL_WIDTH])

    # Three softmaxes over disjoint lane segments computed with ONE shared
    # masked row-max and ONE exp (softmax is shift-invariant per segment; the
    # shared max over the 7 real lanes keeps every segment overflow-safe, and
    # these logits are nowhere near the ~87 gap needed for segment underflow).
    lane = jax.lax.broadcasted_iota(jnp.int32, z.shape, 1)
    NEG = -1e30
    zm = jnp.where(lane < NUM_HEAD_LANES, z, NEG)
    m = jnp.max(zm, axis=-1, keepdims=True)                  # one XLU reduce
    e = jnp.exp(zm - m)                                      # one EUP exp; pads -> 0

    def seg_inv(lo, hi):
        s = jnp.sum(jnp.where((lane >= lo) & (lane < hi), e, 0.0),
                    axis=-1, keepdims=True)
        return pl.reciprocal(s, approx=True)                 # EUP slot

    inv = jnp.where(lane < LEN_OUTPUT_GAS, seg_inv(0, 2),
                    jnp.where(lane < LEN_OUTPUT_GAS + LEN_OUTPUT_BRAKE,
                              seg_inv(2, 4), seg_inv(4, 7)))
    out_ref[...] = (e * inv).astype(out_ref.dtype)           # one lane-dense (TB,128) store


def init_params(key):
    """Deterministic PyTorch-style init: U(-1/sqrt(fan_in), 1/sqrt(fan_in)),
    with eval-mode BatchNorm (bn2..bn6, fresh running stats) folded into the
    preceding Linear (mathematically exact)."""
    weights, biases = [], []
    for (fan_in, fan_out) in SHARED_DIMS:
        key, kw, kb = jax.random.split(key, 3)
        bound = 1.0 / (fan_in ** 0.5)
        weights.append(jax.random.uniform(kw, (fan_in, fan_out), jnp.float32, -bound, bound))
        biases.append(jax.random.uniform(kb, (1, fan_out), jnp.float32, -bound, bound))

    for layer_idx in (1, 2, 3, 4, 5):   # fc2..fc6 (0-based) feed bn2..bn6
        out_dim = SHARED_DIMS[layer_idx][1]
        gamma = jnp.ones((out_dim,), jnp.float32)
        beta = jnp.zeros((out_dim,), jnp.float32)
        r_mean = jnp.zeros((out_dim,), jnp.float32)
        r_var = jnp.ones((out_dim,), jnp.float32)
        scale = gamma / jnp.sqrt(r_var + BN_EPS)
        shift = beta - r_mean * scale
        weights[layer_idx] = weights[layer_idx] * scale[None, :]
        biases[layer_idx] = biases[layer_idx] * scale[None, :] + shift[None, :]

    head_ws, head_bs = [], []
    for (fan_in, fan_out) in HEAD_DIMS:
        key, kw, kb = jax.random.split(key, 3)
        bound = 1.0 / (fan_in ** 0.5)
        head_ws.append(jax.random.uniform(kw, (fan_in, fan_out), jnp.float32, -bound, bound))
        head_bs.append(jax.random.uniform(kb, (1, fan_out), jnp.float32, -bound, bound))

    return weights, biases, head_ws, head_bs


def pack_params(params):
    """Pack the 22 PyTorch-layout arrays into 6 padded kernel operands.

    - weights stored bf16 (fed straight to the MXU); biases stay f32
    - w1 K-padded 595 -> 640; fc5..fc8 + fused (gas|brake|steer) head weights
      zero-padded to 128x128 and stacked into one (640, 128) "tail" slab
    - all 9 biases packed into one (16, 512) slab (row i = layer i's bias)
    """
    weights, biases, head_ws, head_bs = params
    f32, bf16 = jnp.float32, jnp.bfloat16

    w1 = jnp.zeros((K_PAD, 512), f32).at[:LEN_INPUT, :].set(weights[0])

    def pad128(w):
        return jnp.zeros((TAIL_WIDTH, TAIL_WIDTH), f32).at[:w.shape[0], :w.shape[1]].set(w)

    w_head = jnp.concatenate(head_ws, axis=1)                       # (8, 7)
    wtail = jnp.concatenate(
        [pad128(weights[4]), pad128(weights[5]), pad128(weights[6]),
         pad128(weights[7]), pad128(w_head)], axis=0)               # (640, 128)

    bslab = jnp.zeros((16, 512), f32)
    all_b = list(biases) + [jnp.concatenate(head_bs, axis=1)]       # 9 rows used
    for i, b in enumerate(all_b):
        bslab = bslab.at[i:i + 1, :b.shape[1]].set(b)

    return (w1.astype(bf16), weights[1].astype(bf16), weights[2].astype(bf16),
            weights[3].astype(bf16), wtail.astype(bf16), bslab)


@jax.jit
def mainnet_forward(x, packed):
    w1, w2, w3, w4, wtail, bslab = packed
    B = x.shape[0]
    TB = min(512, _round_up(B, 8))          # row tile (multiple of 8 sublanes)
    Bp = _round_up(B, TB)
    # bf16 input halves the dominant streamed bytes; cast is fused with the
    # zero-pad, and operand 0 is marked fusable so XLA may fold it into the call.
    xp = (jnp.zeros((Bp, K_PAD), jnp.bfloat16)
          .at[:B, :LEN_INPUT].set(x.astype(jnp.bfloat16)))

    def resident(arr):
        # Same block every grid step -> stays in VMEM. Single-buffered: no point
        # double-buffering an index that never changes (VMEM headroom on v7x).
        return pl.BlockSpec(arr.shape, lambda i: (0, 0),
                            pipeline_mode=pl.Buffered(1))

    cost = pl.CostEstimate(
        flops=2 * _MACS_PER_ROW * Bp,
        transcendentals=Bp * (TAIL_WIDTH + 3),              # exp slab + 3 reciprocals
        bytes_accessed=Bp * (K_PAD * 2 + TAIL_WIDTH * 4) + _WEIGHT_BYTES,
    )

    out = pl.pallas_call(
        mainnet_kernel,
        out_shape=jax.ShapeDtypeStruct((Bp, TAIL_WIDTH), jnp.float32),
        grid=(Bp // TB,),
        in_specs=[
            pl.BlockSpec((TB, K_PAD), lambda i: (i, 0)),    # streamed batch tiles
            resident(w1), resident(w2), resident(w3),
            resident(w4), resident(wtail), resident(bslab),
        ],
        out_specs=pl.BlockSpec((TB, TAIL_WIDTH), lambda i: (i, 0)),
        compiler_params=pltpu.CompilerParams(
            dimension_semantics=("parallel",),               # shard tiles across TCs (v7x)
            vmem_limit_bytes=32 << 20,                       # ~4 MiB actual footprint
            allow_input_fusion=[True, False, False, False, False, False, False]),
        cost_estimate=cost,
    )(xp, w1, w2, w3, w4, wtail, bslab)

    gas = out[:B, 0:LEN_OUTPUT_GAS]
    brake = out[:B, LEN_OUTPUT_GAS:LEN_OUTPUT_GAS + LEN_OUTPUT_BRAKE]
    steer = out[:B, LEN_OUTPUT_GAS + LEN_OUTPUT_BRAKE:NUM_HEAD_LANES]
    return gas, brake, steer


def reference_forward(x, packed):
    """Plain-JAX reference mirroring the kernel's precision choices
    (bf16 matmul operands, f32 accumulation, f32 bias/ReLU), but with exact
    softmax (kernel uses an approx reciprocal for the denominator)."""
    w1, w2, w3, w4, wtail, bslab = packed
    f32, bf16 = jnp.float32, jnp.bfloat16
    B = x.shape[0]
    h = jnp.zeros((B, K_PAD), f32).at[:, :LEN_INPUT].set(x)
    trunk = [w1, w2, w3, w4] + [wtail[t * TAIL_WIDTH:(t + 1) * TAIL_WIDTH]
                                for t in range(4)]
    for i, w in enumerate(trunk):
        n = w.shape[1]
        z = jnp.dot(h.astype(bf16), w, preferred_element_type=f32) + bslab[i, :n]
        h = jnp.maximum(z, 0.0)
    wh = wtail[4 * TAIL_WIDTH:5 * TAIL_WIDTH]
    z = (jnp.dot(h.astype(bf16), wh, preferred_element_type=f32)[:, :NUM_HEAD_LANES]
         + bslab[8, :NUM_HEAD_LANES])
    gas = jax.nn.softmax(z[:, 0:LEN_OUTPUT_GAS], axis=-1)
    brake = jax.nn.softmax(z[:, LEN_OUTPUT_GAS:LEN_OUTPUT_GAS + LEN_OUTPUT_BRAKE], axis=-1)
    steer = jax.nn.softmax(z[:, LEN_OUTPUT_GAS + LEN_OUTPUT_BRAKE:NUM_HEAD_LANES], axis=-1)
    return gas, brake, steer


if __name__ == "__main__":
    key = jax.random.PRNGKey(0)
    k_param, k_x = jax.random.split(key)

    params = init_params(k_param)
    packed = pack_params(params)

    B = 8
    x = jax.random.normal(k_x, (B, LEN_INPUT), jnp.float32)

    gas, brake, steer = jax.block_until_ready(mainnet_forward(x, packed))

    g_exp, b_exp, s_exp = reference_forward(x, packed)
    assert gas.shape == (B, LEN_OUTPUT_GAS)
    assert brake.shape == (B, LEN_OUTPUT_BRAKE)
    assert steer.shape == (B, LEN_OUTPUT_STEER)
    tol = dict(atol=2e-3, rtol=2e-3)   # approx-reciprocal softmax denominator
    assert jnp.allclose(gas, g_exp, **tol)
    assert jnp.allclose(brake, b_exp, **tol)
    assert jnp.allclose(steer, s_exp, **tol)

    print("KERNEL_OK")
</pallas_src>

<mosaic_0001>
module attributes {stable_mosaic.version = 11 : i64} {
  func.func @mainnet_kernel(%arg0: i32, %arg1: memref<8x640xbf16, #tpu.memory_space<vmem>>, %arg2: memref<640x512xbf16, #tpu.memory_space<vmem>>, %arg3: memref<512x512xbf16, #tpu.memory_space<vmem>>, %arg4: memref<512x256xbf16, #tpu.memory_space<vmem>>, %arg5: memref<256x128xbf16, #tpu.memory_space<vmem>>, %arg6: memref<640x128xbf16, #tpu.memory_space<vmem>>, %arg7: memref<16x512xf32, #tpu.memory_space<vmem>>, %arg8: memref<8x128xf32, #tpu.memory_space<vmem>>) attributes {dimension_semantics = [#tpu.dimension_semantics<parallel>], iteration_bounds = array<i64: 1>, scalar_prefetch = 0 : i64, scratch_operands = 0 : i64, tpu.core_type = #tpu.core_type<tc>, window_params = [{transform_indices = @transform_0, window_bounds = array<i64: 8, 640>}, {pipeline_mode = #tpu.pipeline_mode<synchronous>, transform_indices = @transform_1, window_bounds = array<i64: 640, 512>}, {pipeline_mode = #tpu.pipeline_mode<synchronous>, transform_indices = @transform_2, window_bounds = array<i64: 512, 512>}, {pipeline_mode = #tpu.pipeline_mode<synchronous>, transform_indices = @transform_3, window_bounds = array<i64: 512, 256>}, {pipeline_mode = #tpu.pipeline_mode<synchronous>, transform_indices = @transform_4, window_bounds = array<i64: 256, 128>}, {pipeline_mode = #tpu.pipeline_mode<synchronous>, transform_indices = @transform_5, window_bounds = array<i64: 640, 128>}, {pipeline_mode = #tpu.pipeline_mode<synchronous>, transform_indices = @transform_6, window_bounds = array<i64: 16, 512>}, {transform_indices = @transform_7, window_bounds = array<i64: 8, 128>}]} {
    %c0 = arith.constant 0 : index
    %c0_0 = arith.constant 0 : index
    %0 = vector.load %arg1[%c0, %c0_0] : memref<8x640xbf16, #tpu.memory_space<vmem>>, vector<8x640xbf16>
    %c0_1 = arith.constant 0 : index
    %c0_2 = arith.constant 0 : index
    %1 = vector.load %arg2[%c0_1, %c0_2] : memref<640x512xbf16, #tpu.memory_space<vmem>>, vector<640x512xbf16>
    %c0_3 = arith.constant 0 : index
    %c0_4 = arith.constant 0 : index
    %2 = vector.load %arg7[%c0_3, %c0_4] : memref<16x512xf32, #tpu.memory_space<vmem>>, vector<1x512xf32>
    %cst = arith.constant dense<0.000000e+00> : vector<8x512xf32>
    %3 = tpu.matmul %0, %1, %cst {dimension_numbers = #tpu.dot_dimension_numbers<[1], [0], [0], [1], [0, 0, 1, 1], [], []>} : vector<8x640xbf16>, vector<640x512xbf16>, vector<8x512xf32> -> vector<8x512xf32>
    %4 = vector.broadcast %2 : vector<1x512xf32> to vector<8x512xf32>
    %5 = arith.addf %3, %4 : vector<8x512xf32>
    %cst_5 = arith.constant 0.000000e+00 : f32
    %6 = vector.broadcast %cst_5 : f32 to vector<8x512xf32>
    %7 = arith.maximumf %5, %6 : vector<8x512xf32>
    %c0_6 = arith.constant 0 : index
    %c0_7 = arith.constant 0 : index
    %8 = vector.load %arg3[%c0_6, %c0_7] : memref<512x512xbf16, #tpu.memory_space<vmem>>, vector<512x512xbf16>
    %c1 = arith.constant 1 : index
    %c0_8 = arith.constant 0 : index
    %9 = vector.load %arg7[%c1, %c0_8] : memref<16x512xf32, #tpu.memory_space<vmem>>, vector<1x512xf32>
    %10 = arith.truncf %7 : vector<8x512xf32> to vector<8x512xbf16>
    %cst_9 = arith.constant dense<0.000000e+00> : vector<8x512xf32>
    %11 = tpu.matmul %10, %8, %cst_9 {dimension_numbers = #tpu.dot_dimension_numbers<[1], [0], [0], [1], [0, 0, 1, 1], [], []>} : vector<8x512xbf16>, vector<512x512xbf16>, vector<8x512xf32> -> vector<8x512xf32>
    %12 = vector.broadcast %9 : vector<1x512xf32> to vector<8x512xf32>
    %13 = arith.addf %11, %12 : vector<8x512xf32>
    %cst_10 = arith.constant 0.000000e+00 : f32
    %14 = vector.broadcast %cst_10 : f32 to vector<8x512xf32>
    %15 = arith.maximumf %13, %14 : vector<8x512xf32>
    %c0_11 = arith.constant 0 : index
    %c0_12 = arith.constant 0 : index
    %16 = vector.load %arg4[%c0_11, %c0_12] : memref<512x256xbf16, #tpu.memory_space<vmem>>, vector<512x256xbf16>
    %c2 = arith.constant 2 : index
    %c0_13 = arith.constant 0 : index
    %17 = vector.load %arg7[%c2, %c0_13] : memref<16x512xf32, #tpu.memory_space<vmem>>, vector<1x256xf32>
    %18 = arith.truncf %15 : vector<8x512xf32> to vector<8x512xbf16>
    %cst_14 = arith.constant dense<0.000000e+00> : vector<8x256xf32>
    %19 = tpu.matmul %18, %16, %cst_14 {dimension_numbers = #tpu.dot_dimension_numbers<[1], [0], [0], [1], [0, 0, 1, 1], [], []>} : vector<8x512xbf16>, vector<512x256xbf16>, vector<8x256xf32> -> vector<8x256xf32>
    %20 = vector.broadcast %17 : vector<1x256xf32> to vector<8x256xf32>
    %21 = arith.addf %19, %20 : vector<8x256xf32>
    %cst_15 = arith.constant 0.000000e+00 : f32
    %22 = vector.broadcast %cst_15 : f32 to vector<8x256xf32>
    %23 = arith.maximumf %21, %22 : vector<8x256xf32>
    %c0_16 = arith.constant 0 : index
    %c0_17 = arith.constant 0 : index
    %24 = vector.load %arg5[%c0_16, %c0_17] : memref<256x128xbf16, #tpu.memory_space<vmem>>, vector<256x128xbf16>
    %c3 = arith.constant 3 : index
    %c0_18 = arith.constant 0 : index
    %25 = vector.load %arg7[%c3, %c0_18] : memref<16x512xf32, #tpu.memory_space<vmem>>, vector<1x128xf32>
    %26 = arith.truncf %23 : vector<8x256xf32> to vector<8x256xbf16>
    %cst_19 = arith.constant dense<0.000000e+00> : vector<8x128xf32>
    %27 = tpu.matmul %26, %24, %cst_19 {dimension_numbers = #tpu.dot_dimension_numbers<[1], [0], [0], [1], [0, 0, 1, 1], [], []>} : vector<8x256xbf16>, vector<256x128xbf16>, vector<8x128xf32> -> vector<8x128xf32>
    %28 = vector.broadcast %25 : vector<1x128xf32> to vector<8x128xf32>
    %29 = arith.addf %27, %28 : vector<8x128xf32>
    %cst_20 = arith.constant 0.000000e+00 : f32
    %30 = vector.broadcast %cst_20 : f32 to vector<8x128xf32>
    %31 = arith.maximumf %29, %30 : vector<8x128xf32>
    %c0_21 = arith.constant 0 : index
    %c0_22 = arith.constant 0 : index
    %32 = vector.load %arg6[%c0_21, %c0_22] : memref<640x128xbf16, #tpu.memory_space<vmem>>, vector<128x128xbf16>
    %c4 = arith.constant 4 : index
    %c0_23 = arith.constant 0 : index
    %33 = vector.load %arg7[%c4, %c0_23] : memref<16x512xf32, #tpu.memory_space<vmem>>, vector<1x128xf32>
    %34 = arith.truncf %31 : vector<8x128xf32> to vector<8x128xbf16>
    %cst_24 = arith.constant dense<0.000000e+00> : vector<8x128xf32>
    %35 = tpu.matmul %34, %32, %cst_24 {dimension_numbers = #tpu.dot_dimension_numbers<[1], [0], [0], [1], [0, 0, 1, 1], [], []>} : vector<8x128xbf16>, vector<128x128xbf16>, vector<8x128xf32> -> vector<8x128xf32>
    %36 = vector.broadcast %33 : vector<1x128xf32> to vector<8x128xf32>
    %37 = arith.addf %35, %36 : vector<8x128xf32>
    %cst_25 = arith.constant 0.000000e+00 : f32
    %38 = vector.broadcast %cst_25 : f32 to vector<8x128xf32>
    %39 = arith.maximumf %37, %38 : vector<8x128xf32>
    %c128 = arith.constant 128 : index
    %c0_26 = arith.constant 0 : index
    %40 = vector.load %arg6[%c128, %c0_26] : memref<640x128xbf16, #tpu.memory_space<vmem>>, vector<128x128xbf16>
    %c5 = arith.constant 5 : index
    %c0_27 = arith.constant 0 : index
    %41 = vector.load %arg7[%c5, %c0_27] : memref<16x512xf32, #tpu.memory_space<vmem>>, vector<1x128xf32>
    %42 = arith.truncf %39 : vector<8x128xf32> to vector<8x128xbf16>
    %cst_28 = arith.constant dense<0.000000e+00> : vector<8x128xf32>
    %43 = tpu.matmul %42, %40, %cst_28 {dimension_numbers = #tpu.dot_dimension_numbers<[1], [0], [0], [1], [0, 0, 1, 1], [], []>} : vector<8x128xbf16>, vector<128x128xbf16>, vector<8x128xf32> -> vector<8x128xf32>
    %44 = vector.broadcast %41 : vector<1x128xf32> to vector<8x128xf32>
    %45 = arith.addf %43, %44 : vector<8x128xf32>
    %cst_29 = arith.constant 0.000000e+00 : f32
    %46 = vector.broadcast %cst_29 : f32 to vector<8x128xf32>
    %47 = arith.maximumf %45, %46 : vector<8x128xf32>
    %c256 = arith.constant 256 : index
    %c0_30 = arith.constant 0 : index
    %48 = vector.load %arg6[%c256, %c0_30] : memref<640x128xbf16, #tpu.memory_space<vmem>>, vector<128x128xbf16>
    %c6 = arith.constant 6 : index
    %c0_31 = arith.constant 0 : index
    %49 = vector.load %arg7[%c6, %c0_31] : memref<16x512xf32, #tpu.memory_space<vmem>>, vector<1x128xf32>
    %50 = arith.truncf %47 : vector<8x128xf32> to vector<8x128xbf16>
    %cst_32 = arith.constant dense<0.000000e+00> : vector<8x128xf32>
    %51 = tpu.matmul %50, %48, %cst_32 {dimension_numbers = #tpu.dot_dimension_numbers<[1], [0], [0], [1], [0, 0, 1, 1], [], []>} : vector<8x128xbf16>, vector<128x128xbf16>, vector<8x128xf32> -> vector<8x128xf32>
    %52 = vector.broadcast %49 : vector<1x128xf32> to vector<8x128xf32>
    %53 = arith.addf %51, %52 : vector<8x128xf32>
    %cst_33 = arith.constant 0.000000e+00 : f32
    %54 = vector.broadcast %cst_33 : f32 to vector<8x128xf32>
    %55 = arith.maximumf %53, %54 : vector<8x128xf32>
    %c384 = arith.constant 384 : index
    %c0_34 = arith.constant 0 : index
    %56 = vector.load %arg6[%c384, %c0_34] : memref<640x128xbf16, #tpu.memory_space<vmem>>, vector<128x128xbf16>
    %c7 = arith.constant 7 : index
    %c0_35 = arith.constant 0 : index
    %57 = vector.load %arg7[%c7, %c0_35] : memref<16x512xf32, #tpu.memory_space<vmem>>, vector<1x128xf32>
    %58 = arith.truncf %55 : vector<8x128xf32> to vector<8x128xbf16>
    %cst_36 = arith.constant dense<0.000000e+00> : vector<8x128xf32>
    %59 = tpu.matmul %58, %56, %cst_36 {dimension_numbers = #tpu.dot_dimension_numbers<[1], [0], [0], [1], [0, 0, 1, 1], [], []>} : vector<8x128xbf16>, vector<128x128xbf16>, vector<8x128xf32> -> vector<8x128xf32>
    %60 = vector.broadcast %57 : vector<1x128xf32> to vector<8x128xf32>
    %61 = arith.addf %59, %60 : vector<8x128xf32>
    %cst_37 = arith.constant 0.000000e+00 : f32
    %62 = vector.broadcast %cst_37 : f32 to vector<8x128xf32>
    %63 = arith.maximumf %61, %62 : vector<8x128xf32>
    %c512 = arith.constant 512 : index
    %c0_38 = arith.constant 0 : index
    %64 = vector.load %arg6[%c512, %c0_38] : memref<640x128xbf16, #tpu.memory_space<vmem>>, vector<128x128xbf16>
    %65 = arith.truncf %63 : vector<8x128xf32> to vector<8x128xbf16>
    %cst_39 = arith.constant dense<0.000000e+00> : vector<8x128xf32>
    %66 = tpu.matmul %65, %64, %cst_39 {dimension_numbers = #tpu.dot_dimension_numbers<[1], [0], [0], [1], [0, 0, 1, 1], [], []>} : vector<8x128xbf16>, vector<128x128xbf16>, vector<8x128xf32> -> vector<8x128xf32>
    %c8 = arith.constant 8 : index
    %c0_40 = arith.constant 0 : index
    %67 = vector.load %arg7[%c8, %c0_40] : memref<16x512xf32, #tpu.memory_space<vmem>>, vector<1x128xf32>
    %68 = vector.broadcast %67 : vector<1x128xf32> to vector<8x128xf32>
    %69 = arith.addf %66, %68 : vector<8x128xf32>
    %70 = tpu.iota {dimensions = array<i32: 1>} : vector<8x128xi32>
    %c7_i32 = arith.constant 7 : i32
    %71 = vector.broadcast %c7_i32 : i32 to vector<8x128xi32>
    %72 = arith.cmpi slt, %70, %71 : vector<8x128xi32>
    %cst_41 = arith.constant -1.000000e+30 : f32
    %73 = vector.broadcast %cst_41 : f32 to vector<8x128xf32>
    %74 = arith.select %72, %69, %73 : vector<8x128xi1>, vector<8x128xf32>
    %cst_42 = arith.constant dense<0xFF800000> : vector<8xf32>
    %75 = vector.multi_reduction <maximumf>, %74, %cst_42 [1] : vector<8x128xf32> to vector<8xf32>
    %76 = vector.shape_cast %75 : vector<8xf32> to vector<8x1xf32>
    %77 = vector.broadcast %76 : vector<8x1xf32> to vector<8x128xf32>
    %78 = arith.subf %74, %77 : vector<8x128xf32>
    %79 = math.exp %78 : vector<8x128xf32>
    %c2_i32 = arith.constant 2 : i32
    %80 = vector.broadcast %c2_i32 : i32 to vector<8x128xi32>
    %81 = arith.cmpi slt, %70, %80 : vector<8x128xi32>
    %c0_i32 = arith.constant 0 : i32
    %82 = vector.broadcast %c0_i32 : i32 to vector<8x128xi32>
    %83 = arith.cmpi sge, %70, %82 : vector<8x128xi32>
    %c2_i32_43 = arith.constant 2 : i32
    %84 = vector.broadcast %c2_i32_43 : i32 to vector<8x128xi32>
    %85 = arith.cmpi slt, %70, %84 : vector<8x128xi32>
    %86 = arith.andi %83, %85 : vector<8x128xi1>
    %cst_44 = arith.constant 0.000000e+00 : f32
    %87 = vector.broadcast %cst_44 : f32 to vector<8x128xf32>
    %88 = arith.select %86, %79, %87 : vector<8x128xi1>, vector<8x128xf32>
    %cst_45 = arith.constant dense<0.000000e+00> : vector<8xf32>
    %89 = vector.multi_reduction <add>, %88, %cst_45 [1] : vector<8x128xf32> to vector<8xf32>
    %90 = vector.shape_cast %89 : vector<8xf32> to vector<8x1xf32>
    %91 = tpu.reciprocal %90 {approx = true} : vector<8x1xf32> -> vector<8x1xf32>
    %c4_i32 = arith.constant 4 : i32
    %92 = vector.broadcast %c4_i32 : i32 to vector<8x128xi32>
    %93 = arith.cmpi slt, %70, %92 : vector<8x128xi32>
    %c2_i32_46 = arith.constant 2 : i32
    %94 = vector.broadcast %c2_i32_46 : i32 to vector<8x128xi32>
    %95 = arith.cmpi sge, %70, %94 : vector<8x128xi32>
    %c4_i32_47 = arith.constant 4 : i32
    %96 = vector.broadcast %c4_i32_47 : i32 to vector<8x128xi32>
    %97 = arith.cmpi slt, %70, %96 : vector<8x128xi32>
    %98 = arith.andi %95, %97 : vector<8x128xi1>
    %cst_48 = arith.constant 0.000000e+00 : f32
    %99 = vector.broadcast %cst_48 : f32 to vector<8x128xf32>
    %100 = arith.select %98, %79, %99 : vector<8x128xi1>, vector<8x128xf32>
    %cst_49 = arith.constant dense<0.000000e+00> : vector<8xf32>
    %101 = vector.multi_reduction <add>, %100, %cst_49 [1] : vector<8x128xf32> to vector<8xf32>
    %102 = vector.shape_cast %101 : vector<8xf32> to vector<8x1xf32>
    %103 = tpu.reciprocal %102 {approx = true} : vector<8x1xf32> -> vector<8x1xf32>
    %c4_i32_50 = arith.constant 4 : i32
    %104 = vector.broadcast %c4_i32_50 : i32 to vector<8x128xi32>
    %105 = arith.cmpi sge, %70, %104 : vector<8x128xi32>
    %c7_i32_51 = arith.constant 7 : i32
    %106 = vector.broadcast %c7_i32_51 : i32 to vector<8x128xi32>
    %107 = arith.cmpi slt, %70, %106 : vector<8x128xi32>
    %108 = arith.andi %105, %107 : vector<8x128xi1>
    %cst_52 = arith.constant 0.000000e+00 : f32
    %109 = vector.broadcast %cst_52 : f32 to vector<8x128xf32>
    %110 = arith.select %108, %79, %109 : vector<8x128xi1>, vector<8x128xf32>
    %cst_53 = arith.constant dense<0.000000e+00> : vector<8xf32>
    %111 = vector.multi_reduction <add>, %110, %cst_53 [1] : vector<8x128xf32> to vector<8xf32>
    %112 = vector.shape_cast %111 : vector<8xf32> to vector<8x1xf32>
    %113 = tpu.reciprocal %112 {approx = true} : vector<8x1xf32> -> vector<8x1xf32>
    %114 = vector.shape_cast %103 : vector<8x1xf32> to vector<8x1xf32>
    %115 = vector.broadcast %114 : vector<8x1xf32> to vector<8x128xf32>
    %116 = vector.shape_cast %113 : vector<8x1xf32> to vector<8x1xf32>
    %117 = vector.broadcast %116 : vector<8x1xf32> to vector<8x128xf32>
    %118 = arith.select %93, %115, %117 : vector<8x128xi1>, vector<8x128xf32>
    %119 = vector.shape_cast %91 : vector<8x1xf32> to vector<8x1xf32>
    %120 = vector.broadcast %119 : vector<8x1xf32> to vector<8x128xf32>
    %121 = arith.select %81, %120, %118 : vector<8x128xi1>, vector<8x128xf32>
    %122 = arith.mulf %79, %121 : vector<8x128xf32>
    %c0_54 = arith.constant 0 : index
    %c0_55 = arith.constant 0 : index
    %123 = vector.load %arg8[%c0_54, %c0_55] : memref<8x128xf32, #tpu.memory_space<vmem>>, vector<8x128xf32>
    tpu.vector_store %arg8[%c0_54, %c0_55], %122 {strides = array<i32>} : memref<8x128xf32, #tpu.memory_space<vmem>>, vector<8x128xf32>,
    return
  }
  func.func @transform_0(%arg0: i32) -> (i32, i32) {
    %c0_i32 = arith.constant 0 : i32
    %c0_i32_0 = arith.constant 0 : i32
    return %arg0, %c0_i32 : i32, i32
  }
  func.func @transform_1(%arg0: i32) -> (i32, i32) {
    %c0_i32 = arith.constant 0 : i32
    %c0_i32_0 = arith.constant 0 : i32
    %c0_i32_1 = arith.constant 0 : i32
    return %c0_i32, %c0_i32_0 : i32, i32
  }
  func.func @transform_2(%arg0: i32) -> (i32, i32) {
    %c0_i32 = arith.constant 0 : i32
    %c0_i32_0 = arith.constant 0 : i32
    %c0_i32_1 = arith.constant 0 : i32
    return %c0_i32, %c0_i32_0 : i32, i32
  }
  func.func @transform_3(%arg0: i32) -> (i32, i32) {
    %c0_i32 = arith.constant 0 : i32
    %c0_i32_0 = arith.constant 0 : i32
    %c0_i32_1 = arith.constant 0 : i32
    return %c0_i32, %c0_i32_0 : i32, i32
  }
  func.func @transform_4(%arg0: i32) -> (i32, i32) {
    %c0_i32 = arith.constant 0 : i32
    %c0_i32_0 = arith.constant 0 : i32
    %c0_i32_1 = arith.constant 0 : i32
    return %c0_i32, %c0_i32_0 : i32, i32
  }
  func.func @transform_5(%arg0: i32) -> (i32, i32) {
    %c0_i32 = arith.constant 0 : i32
    %c0_i32_0 = arith.constant 0 : i32
    %c0_i32_1 = arith.constant 0 : i32
    return %c0_i32, %c0_i32_0 : i32, i32
  }
  func.func @transform_6(%arg0: i32) -> (i32, i32) {
    %c0_i32 = arith.constant 0 : i32
    %c0_i32_0 = arith.constant 0 : i32
    %c0_i32_1 = arith.constant 0 : i32
    return %c0_i32, %c0_i32_0 : i32, i32
  }
  func.func @transform_7(%arg0: i32) -> (i32, i32) {
    %c0_i32 = arith.constant 0 : i32
    %c0_i32_0 = arith.constant 0 : i32
    return %arg0, %c0_i32 : i32, i32
  }
}

</mosaic_0001>

<bundles_post_ra>
// kernel: mainnet_forward.2
= control target key start
LH: loop header
LB: loop body
LE: loop exit
PB: predicated region body
PF: predicated region fallthrough
CT: control target
= control target key end

     0   :  { %s5198_s0 = inlined_call_operand.hbm [shape: bf16[640,512], index: 0, kind: input, shape index: {}]   ;;  %s5199_s1 = inlined_call_operand.hbm [shape: bf16[512,512], index: 1, kind: input, shape index: {}]   ;;  %s5200_s2 = inlined_call_operand.hbm [shape: bf16[512,256], index: 2, kind: input, shape index: {}]   ;;  %s5201_s3 = inlined_call_operand.hbm [shape: bf16[256,128], index: 3, kind: input, shape index: {}]   ;;  %s5202_s4 = inlined_call_operand.hbm [shape: bf16[640,128], index: 4, kind: input, shape index: {}]   ;;  %s5203_s5 = inlined_call_operand.hbm [shape: f32[16,512], index: 5, kind: input, shape index: {}]   ;;  %s5204_s6 = inlined_call_operand.vmem [shape: bf16[8,595], index: 6, kind: input, shape index: {}]   ;;  %s5205_s7 = inlined_call_operand.<no memory space> [shape: bf16[], index: 7, kind: input, shape index: {}]   ;;  %s5206_s8 = inlined_call_operand.vmem [shape: f32[8,128], index: 8, kind: output, shape index: {}]  }
   0x1   :  { %v13_v0 = vstv %s5205_s7 }
   0x2   :  { %v5038_v1 = vunpack.i.l.bf16 %v13_v0 }
   0x3   :  { %18 = vsyncpa [#allocation8], 0 }
   0x4   :  { %19 = vsyncpa [#allocation10], 0 }
   0x5   :  { %20 = vsyncpa [#allocation13], 0 }
   0x6   :  { %21 = vsyncpa [#allocation16], 0  ;;  %s4973_s29 = smov [#allocation9]   ;;  %s4974_s9 = smov [#allocation12]  }
   0x7   :  { %s41_s30 = sshll.u32 %s4973_s29, 4  ;;  %s65_s10 = sshll.u32 %s4974_s9, 4  ;;  %s42_s30 = int_to_ptr.vmem [resolvable:$true] %s41_s30  ;;  %s66_s10 = int_to_ptr.vmem [resolvable:$true] %s65_s10 }
   0x8   :  { %s4853_s11 = scalar_lea.vmem %s42_s30, 16384  ;;  %p4858_p1 = scmp.lt.s32.totalorder %s42_s30, %s42_s30 }
   0x9   :  { %p4854_p0 = scmp.ne.s32.totalorder %s42_s30, %s4853_s11  ;;  %p4859_p2 = scmp.lt.s32.totalorder %s4853_s11, %s4853_s11 }
   0xb   :  { %p4860_p3 = por %p4859_p2, %p4858_p1 }
   0xd   :  { %p4861_p4 = pnand %p4860_p3, %p4854_p0 }
   0xf   :  { %4864 = shalt.err (!%p4861_p4)
}
  0x10   :  { %s4975_s7 = smov 256   ;;  %s4976_s12 = smov 16  }
  0x11   :  { %47 = dma.hbm_to_vmem [thread:$0]  %s5199_s1, 16384, %s42_s30, [#allocation10], %s4975_s7, %s4975_s7, %s4976_s12  }
  0x12   :  { %s4873_s15 = scalar_lea.vmem %s66_s10, 2048  ;;  %p4878_p6 = scmp.lt.s32.totalorder %s66_s10, %s66_s10 }
  0x13   :  { %p4874_p5 = scmp.ne.s32.totalorder %s66_s10, %s4873_s15  ;;  %p4879_p7 = scmp.lt.s32.totalorder %s4873_s15, %s4873_s15 }
  0x15   :  { %p4880_p8 = por %p4879_p7, %p4878_p6 }
  0x17   :  { %p4881_p9 = pnand %p4880_p8, %p4874_p5 }
  0x19   :  { %4884 = shalt.err (!%p4881_p9)
}
  0x1a   :  { %s4977_s16 = smov 64   ;;  %s4978_s17 = smov 4  }
  0x1b   :  { %71 = dma.hbm_to_vmem [thread:$0]  %s5201_s3, 2048, %s66_s10, [#allocation13], %s4977_s16, %s4977_s16, %s4978_s17  }
  0x1c   :  { %s4979_s20 = smov [#allocation7]   ;;  %s4980_s22 = smov [#allocation11]  }
  0x1d   :  { %s29_s21 = sshll.u32 %s4979_s20, 4  ;;  %s53_s1 = sshll.u32 %s4980_s22, 4  ;;  %s30_s21 = int_to_ptr.vmem [resolvable:$true] %s29_s21  ;;  %s54_s1 = int_to_ptr.vmem [resolvable:$true] %s53_s1 }
  0x1e   :  { %s4893_s23 = scalar_lea.vmem %s30_s21, 20480  ;;  %p4898_p11 = scmp.lt.s32.totalorder %s30_s21, %s30_s21 }
  0x1f   :  { %p4894_p10 = scmp.ne.s32.totalorder %s30_s21, %s4893_s23  ;;  %p4899_p12 = scmp.lt.s32.totalorder %s4893_s23, %s4893_s23 }
  0x21   :  { %p4900_p13 = por %p4899_p12, %p4898_p11 }
  0x23   :  { %p4901_p0 = pnand %p4900_p13, %p4894_p10 }
  0x25   :  { %4904 = shalt.err (!%p4901_p0)
}
  0x26   :  { %35 = dma.hbm_to_vmem [thread:$0]  %s5198_s0, 20480, %s30_s21, [#allocation8], %s4975_s7, %s4975_s7, %s4976_s12  }
  0x27   :  { %s4913_s26 = scalar_lea.vmem %s54_s1, 8192  ;;  %p4918_p2 = scmp.lt.s32.totalorder %s54_s1, %s54_s1 }
  0x28   :  { %p4914_p1 = scmp.ne.s32.totalorder %s54_s1, %s4913_s26  ;;  %p4919_p3 = scmp.lt.s32.totalorder %s4913_s26, %s4913_s26 }
  0x2a   :  { %p4920_p4 = por %p4919_p3, %p4918_p2 }
  0x2c   :  { %p4921_p5 = pnand %p4920_p4, %p4914_p1 }
  0x2e   :  { %4924 = shalt.err (!%p4921_p5)
}
  0x2f   :  { %s4981_s3 = smov 128   ;;  %s4982_s27 = smov 8  }
  0x30   :  { %59 = dma.hbm_to_vmem [thread:$0]  %s5200_s2, 8192, %s54_s1, [#allocation10], %s4981_s3, %s4981_s3, %s4982_s27  }
  0x31   :  { %s4983_s30 = smov [#allocation14]   ;;  %s4984_s10 = smov [#allocation15]  }
  0x32   :  { %s77_s9 = sshll.u32 %s4983_s30, 4  ;;  %s89_s11 = sshll.u32 %s4984_s10, 4  ;;  %s78_s9 = int_to_ptr.vmem [resolvable:$true] %s77_s9  ;;  %s90_s11 = int_to_ptr.vmem [resolvable:$true] %s89_s11 }
  0x33   :  { %s4933_s0 = scalar_lea.vmem %s78_s9, 5120  ;;  %p4938_p7 = scmp.lt.s32.totalorder %s78_s9, %s78_s9 }
  0x34   :  { %p4934_p6 = scmp.ne.s32.totalorder %s78_s9, %s4933_s0  ;;  %p4939_p8 = scmp.lt.s32.totalorder %s4933_s0, %s4933_s0 }
  0x36   :  { %p4940_p9 = por %p4939_p8, %p4938_p7 }
  0x38   :  { %p4941_p10 = pnand %p4940_p9, %p4934_p6 }
  0x3a   :  { %4944 = shalt.err (!%p4941_p10)
}
  0x3b   :  { %83 = dma.hbm_to_vmem [thread:$0]  %s5202_s4, 5120, %s78_s9, [#allocation13], %s4977_s16, %s4977_s16, %s4978_s17  }
  0x3c   :  { %s4953_s2 = scalar_lea.vmem %s90_s11, 1024  ;;  %p4958_p12 = scmp.lt.s32.totalorder %s90_s11, %s90_s11 }
  0x3d   :  { %p4954_p11 = scmp.ne.s32.totalorder %s90_s11, %s4953_s2  ;;  %p4959_p13 = scmp.lt.s32.totalorder %s4953_s2, %s4953_s2 }
  0x3f   :  { %p4960_p0 = por %p4959_p13, %p4958_p12 }
  0x41   :  { %p4961_p1 = pnand %p4960_p0, %p4954_p11 }
  0x43   :  { %4964 = shalt.err (!%p4961_p1)
}
  0x44   :  { %s4985_s13 = smov 512   ;;  %s4986_s14 = smov 32  }
  0x45   :  { %95 = dma.hbm_to_vmem [thread:$0]  %s5203_s5, 1024, %s90_s11, [#allocation16], %s4985_s13, %s4985_s13, %s4986_s14  }
  0x46   :  { %4965 = dma.done.wait [#allocation8], 20480  }
  0x47   :  { %4966 = vsyncadd [#allocation8], 4294946816 }
  0x48   :  { %4967 = dma.done.wait [#allocation10], 24576  }
  0x49   :  { %4968 = vsyncadd [#allocation10], 4294942720 }
  0x4a   :  { %4969 = dma.done.wait [#allocation13], 7168  }
  0x4b   :  { %4970 = vsyncadd [#allocation13], 4294960128 }
  0x4c   :  { %4971 = dma.done.wait [#allocation16], 1024  }
  0x4d   :  { %4972 = vsyncadd [#allocation16], 4294966272  ;;  %v4247_v2 = vld [vmem:[#allocation7 + $0xe4] ss:$16 sps:$4 sm:$0xff]   ;;  %v4251_v4 = vld [vmem:[#allocation7 + $0xe0] ss:$16 sps:$4 sm:$0xff]   ;;  %v181_v63 = vlaneseq }
  0x4e   :  { %v4249_v3 = vld [vmem:[#allocation7 + $0x2e4] ss:$16 sps:$4 sm:$0xff]   ;;  %1195 = vmatprep.subr.bf16.mxu0 %v4247_v2  ;;  %v4252_v5 = vld [vmem:[#allocation7 + $0x2e0] ss:$16 sps:$4 sm:$0xff]   ;;  %v4345_v51 = vld [vmem:[%s5204_s6 + $0x8] sm:$0xff]   ;;  %vm4989_vm1 = vmmov 0  }
  0x4f   :  { %1236 = vmatprep.subr.bf16.mxu1 %v4249_v3  ;;  %v4253_v6 = vld [vmem:[#allocation7 + $0xc4] ss:$16 sps:$4 sm:$0xff]   ;;  %1196 = vmatpush1.bf16.msra.mxu0 %v4251_v4  ;;  %v4257_v8 = vld [vmem:[#allocation7 + $0xc0] ss:$16 sps:$4 sm:$0xff]   ;;  %v5070_v54 = vcombine.high %v4345_v51, %v4345_v51 }
  0x50   :  { %1237 = vmatpush1.bf16.msra.mxu1 %v4252_v5  ;;  %v4255_v7 = vld [vmem:[#allocation7 + $0x2c4] ss:$16 sps:$4 sm:$0xff]   ;;  %1197 = vmatprep.subr.bf16.mxu0 %v4253_v6  ;;  %v4258_v9 = vld [vmem:[#allocation7 + $0x2c0] ss:$16 sps:$4 sm:$0xff]   ;;  %v5074_v5 = vand.u32 127, %v181_v63 }
  0x51   :  { %1238 = vmatprep.subr.bf16.mxu1 %v4255_v7  ;;  %v4259_v10 = vld [vmem:[#allocation7 + $0xa4] ss:$16 sps:$4 sm:$0xff]   ;;  %v4263_v12 = vld [vmem:[#allocation7 + $0xa0] ss:$16 sps:$4 sm:$0xff]   ;;  %1268 = vmatprep.mubr.bf16.mxu1 %v5070_v54 }
  0x52   :  { %v4261_v11 = vld [vmem:[#allocation7 + $0x2a4] ss:$16 sps:$4 sm:$0xff]   ;;  %v4264_v13 = vld [vmem:[#allocation7 + $0x2a0] ss:$16 sps:$4 sm:$0xff]   ;;  %vm3601_vm2 = vcmp.lt.s32.totalorder %v5074_v5, 7  ;;  %vm3622_vm3 = vcmp.ge.s32.totalorder %v5074_v5, 4 }
  0x53   :  { %1198 = vmatpush1.bf16.msra.mxu0 %v4257_v8  ;;  %v4265_v14 = vld [vmem:[#allocation7 + $0x84] ss:$16 sps:$4 sm:$0xff]   ;;  %v4269_v16 = vld [vmem:[#allocation7 + $0x80] ss:$16 sps:$4 sm:$0xff]   ;;  %vm3615_vm4 = vcmp.lt.s32.totalorder %v5074_v5, 4  ;;  %vm3616_vm5 = vcmp.ge.s32.totalorder %v5074_v5, 2  ;;  %vm3623_vm6 = vmand %vm3622_vm3, %vm3601_vm2 }
  0x54   :  { %1239 = vmatpush1.bf16.msra.mxu1 %v4258_v9  ;;  %1199 = vmatprep.subr.bf16.mxu0 %v4259_v10  ;;  %v4267_v15 = vld [vmem:[#allocation7 + $0x284] ss:$16 sps:$4 sm:$0xff]   ;;  %v4270_v17 = vld [vmem:[#allocation7 + $0x280] ss:$16 sps:$4 sm:$0xff]   ;;  %v183_v10 = vadd.s32 512, %v5074_v5  ;;  %vm3617_vm7 = vmand %vm3616_vm5, %vm3615_vm4  ;;  %vm3608_vm8 = vcmp.lt.s32.totalorder %v5074_v5, 2 }
  0x55   :  { %1240 = vmatprep.subr.bf16.mxu1 %v4261_v11  ;;  %v4271_v18 = vld [vmem:[#allocation7 + $0x64] ss:$16 sps:$4 sm:$0xff]   ;;  %v4275_v20 = vld [vmem:[#allocation7 + $0x60] ss:$16 sps:$4 sm:$0xff]  }
  0x56   :  { %v4273_v19 = vld [vmem:[#allocation7 + $0x264] ss:$16 sps:$4 sm:$0xff]   ;;  %v4276_v21 = vld [vmem:[#allocation7 + $0x260] ss:$16 sps:$4 sm:$0xff]   ;;  %vm184_vm0 = vcmp.lt.s32.totalorder %v183_v10, 595 }
  0x57   :  { %1200 = vmatpush1.bf16.msra.mxu0 %v4263_v12  ;;  %v4277_v22 = vld [vmem:[#allocation7 + $0x44] ss:$16 sps:$4 sm:$0xff]   ;;  %v4281_v24 = vld [vmem:[#allocation7 + $0x40] ss:$16 sps:$4 sm:$0xff]   ;;  %v4353_v12 = vld [vmem:[#allocation7 + $0xec] ss:$16 sps:$4 sm:$0xff]  }
  0x58   :  { %1241 = vmatpush1.bf16.msra.mxu1 %v4264_v13  ;;  %1201 = vmatprep.subr.bf16.mxu0 %v4265_v14  ;;  %v4279_v23 = vld [vmem:[#allocation7 + $0x244] ss:$16 sps:$4 sm:$0xff]   ;;  %v4282_v25 = vld [vmem:[#allocation7 + $0x240] ss:$16 sps:$4 sm:$0xff]   ;;  %v5079_v14 = vcombine.low %v4345_v51, %v4345_v51  ;;  %v4402_v51 = vld [vmem:[#allocation7 + $0x2ec] ss:$16 sps:$4 sm:$0xff]  }
  0x59   :  { %1242 = vmatprep.subr.bf16.mxu1 %v4267_v15  ;;  %v4283_v26 = vld [vmem:[#allocation7 + $0x24] ss:$16 sps:$4 sm:$0xff]   ;;  %v4287_v28 = vld [vmem:[#allocation7 + $0x20] ss:$16 sps:$4 sm:$0xff]   ;;  %v4424_v10 = vld [vmem:[#allocation7 + $0x268] ss:$16 sps:$4 sm:$0xff]  }
  0x5a   :  { %v4285_v27 = vld [vmem:[#allocation7 + $0x224] ss:$16 sps:$4 sm:$0xff]   ;;  %v4288_v29 = vld [vmem:[#allocation7 + $0x220] ss:$16 sps:$4 sm:$0xff]  }
  0x5b   :  { %1202 = vmatpush1.bf16.msra.mxu0 %v4269_v16  ;;  %v4289_v30 = vld [vmem:[#allocation7 + $0x4] ss:$16 sps:$4 sm:$0xff]   ;;  %v4293_v32 = vld [vmem:[#allocation7] ss:$16 sps:$4 sm:$0xff]   ;;  %v4351_v16 = vld [vmem:[#allocation7 + $0xe8] ss:$16 sps:$4 sm:$0xff]  }
  0x5c   :  { %1243 = vmatpush1.bf16.msra.mxu1 %v4270_v17  ;;  %1203 = vmatprep.subr.bf16.mxu0 %v4271_v18  ;;  %v4291_v31 = vld [vmem:[#allocation7 + $0x204] ss:$16 sps:$4 sm:$0xff]   ;;  %v4294_v33 = vld [vmem:[#allocation7 + $0x200] ss:$16 sps:$4 sm:$0xff]   ;;  %v4359_v18 = vld [vmem:[#allocation7 + $0xcc] ss:$16 sps:$4 sm:$0xff]  }
  0x5d   :  { %1244 = vmatprep.subr.bf16.mxu1 %v4273_v19  ;;  %v4295_v34 = vld [vmem:[#allocation7 + $0x1e4] ss:$16 sps:$4 sm:$0xff]   ;;  %v4299_v36 = vld [vmem:[#allocation7 + $0x1e0] ss:$16 sps:$4 sm:$0xff]  }
  0x5e   :  { %v4297_v35 = vld [vmem:[#allocation7 + $0x3e4] ss:$16 sps:$4 sm:$0xff]   ;;  %v4300_v37 = vld [vmem:[#allocation7 + $0x3e0] ss:$16 sps:$4 sm:$0xff]  }
  0x5f   :  { %1204 = vmatpush1.bf16.msra.mxu0 %v4275_v20  ;;  %v4301_v38 = vld [vmem:[#allocation7 + $0x1c4] ss:$16 sps:$4 sm:$0xff]   ;;  %v4305_v40 = vld [vmem:[#allocation7 + $0x1c0] ss:$16 sps:$4 sm:$0xff]  }
  0x60   :  { %1245 = vmatpush1.bf16.msra.mxu1 %v4276_v21  ;;  %1205 = vmatprep.subr.bf16.mxu0 %v4277_v22  ;;  %v4303_v39 = vld [vmem:[#allocation7 + $0x3c4] ss:$16 sps:$4 sm:$0xff]   ;;  %v4306_v41 = vld [vmem:[#allocation7 + $0x3c0] ss:$16 sps:$4 sm:$0xff]   ;;  %v4357_v22 = vld [vmem:[#allocation7 + $0xc8] ss:$16 sps:$4 sm:$0xff]  }
  0x61   :  { %1246 = vmatprep.subr.bf16.mxu1 %v4279_v23  ;;  %v4307_v42 = vld [vmem:[#allocation7 + $0x1a4] ss:$16 sps:$4 sm:$0xff]   ;;  %v4311_v44 = vld [vmem:[#allocation7 + $0x1a0] ss:$16 sps:$4 sm:$0xff]  }
  0x62   :  { %v4309_v43 = vld [vmem:[#allocation7 + $0x3a4] ss:$16 sps:$4 sm:$0xff]   ;;  %v4312_v45 = vld [vmem:[#allocation7 + $0x3a0] ss:$16 sps:$4 sm:$0xff]  }
  0x63   :  { %1206 = vmatpush1.bf16.msra.mxu0 %v4281_v24  ;;  %v4313_v46 = vld [vmem:[#allocation7 + $0x184] ss:$16 sps:$4 sm:$0xff]   ;;  %v4317_v48 = vld [vmem:[#allocation7 + $0x180] ss:$16 sps:$4 sm:$0xff]  }
  0x64   :  { %1247 = vmatpush1.bf16.msra.mxu1 %v4282_v25  ;;  %1207 = vmatprep.subr.bf16.mxu0 %v4283_v26  ;;  %v4315_v47 = vld [vmem:[#allocation7 + $0x384] ss:$16 sps:$4 sm:$0xff]   ;;  %v4318_v49 = vld [vmem:[#allocation7 + $0x380] ss:$16 sps:$4 sm:$0xff]   ;;  %v4365_v25 = vld [vmem:[#allocation7 + $0xac] ss:$16 sps:$4 sm:$0xff]  }
  0x65   :  { %1248 = vmatprep.subr.bf16.mxu1 %v4285_v27  ;;  %v114_v50 = vld [vmem:[%s5204_s6] sm:$0xff]   ;;  %v3643_v19 = vld [vmem:[%s5204_s6 + $0x10] sm:$0xf]  ;;  %v4987_v26 = vmov 0.0  }
  0x66   :  { %125 = vst [vmem:[#allocation17] sm:$0xff] %v114_v50   ;;  %v4319_v52 = vld [vmem:[#allocation7 + $0x164] ss:$16 sps:$4 sm:$0xff]   ;;  %v4323_v55 = vld [vmem:[#allocation7 + $0x160] ss:$16 sps:$4 sm:$0xff]   ;;  %v179_v20 = vunpack.c.l.bf16 %v3643_v19 }
  0x67   :  { %1208 = vmatpush1.bf16.msra.mxu0 %v4287_v28  ;;  %v4321_v53 = vld [vmem:[#allocation7 + $0x364] ss:$16 sps:$4 sm:$0xff]   ;;  %v4324_v56 = vld [vmem:[#allocation7 + $0x360] ss:$16 sps:$4 sm:$0xff]   ;;  %v4988_v28 = vmov 0  }
  0x68   :  { %1249 = vmatpush1.bf16.msra.mxu1 %v4288_v29  ;;  %1209 = vmatprep.subr.bf16.mxu0 %v4289_v30  ;;  %v4325_v57 = vld [vmem:[#allocation7 + $0x144] ss:$16 sps:$4 sm:$0xff]   ;;  %v4329_v60 = vld [vmem:[#allocation7 + $0x140] ss:$16 sps:$4 sm:$0xff]   ;;  %v185_v23 = vsel %vm184_vm0, %v179_v20, %v5038_v1  ;;  %v4363_v30 = vld [vmem:[#allocation7 + $0xa8] ss:$16 sps:$4 sm:$0xff]  }
  0x69   :  { %1250 = vmatprep.subr.bf16.mxu1 %v4291_v31  ;;  %v4327_v58 = vld [vmem:[#allocation7 + $0x344] ss:$16 sps:$4 sm:$0xff]   ;;  %v4330_v62 = vld [vmem:[#allocation7 + $0x340] ss:$16 sps:$4 sm:$0xff]   ;;  %v187_v27 = vpack.c.bf16 %v4987_v26, %v185_v23  ;;  %v4371_v1 = vld [vmem:[#allocation7 + $0x8c] ss:$16 sps:$4 sm:$0xff]  }
  0x6a   :  { %v4331_v0 = vld [vmem:[#allocation7 + $0x124] ss:$16 sps:$4 sm:$0xff]   ;;  %v4335_v3 = vld [vmem:[#allocation7 + $0x120] ss:$16 sps:$4 sm:$0xff]   ;;  %v4399_v50 = vld [vmem:[#allocation7 + $0x1ec] ss:$16 sps:$4 sm:$0xff]  }
  0x6b   :  { %1210 = vmatpush1.bf16.msra.mxu0 %v4293_v32  ;;  %v4333_v2 = vld [vmem:[#allocation7 + $0x324] ss:$16 sps:$4 sm:$0xff]   ;;  %v4336_v4 = vld [vmem:[#allocation7 + $0x320] ss:$16 sps:$4 sm:$0xff]   ;;  %190 = vst [vmem:[#allocation17 + $0x10] sm:$0xf] %v187_v27 }
  0x6c   :  { %1251 = vmatpush1.bf16.msra.mxu1 %v4294_v33  ;;  %1211 = vmatprep.subr.bf16.mxu0 %v4295_v34  ;;  %v4337_v6 = vld [vmem:[#allocation7 + $0x104] ss:$16 sps:$4 sm:$0xff]   ;;  %v4341_v8 = vld [vmem:[#allocation7 + $0x100] ss:$16 sps:$4 sm:$0xff]   ;;  %v4369_v33 = vld [vmem:[#allocation7 + $0x88] ss:$16 sps:$4 sm:$0xff]  }
  0x6d   :  { %1252 = vmatprep.subr.bf16.mxu1 %v4297_v35  ;;  %v192_v59 = vld [vmem:[#allocation17] sm:$0xff]  ;;  %v4377_v35 = vld [vmem:[#allocation7 + $0x6c] ss:$16 sps:$4 sm:$0xff]   ;;  %v4436_v19 = vld [vmem:[#allocation7 + $0x228] ss:$16 sps:$4 sm:$0xff]  }
  0x6e   :  { %v3645_v61 = vcombine.high %v192_v59, %v192_v59  ;;  %v4339_v7 = vld [vmem:[#allocation7 + $0x304] ss:$16 sps:$4 sm:$0xff]   ;;  %v4342_v9 = vld [vmem:[#allocation7 + $0x300] ss:$16 sps:$4 sm:$0xff]   ;;  %v5077_v13 = vcombine.low %v192_v59, %v192_v59  ;;  %v4406_v59 = vld [vmem:[#allocation7 + $0x2c8] ss:$16 sps:$4 sm:$0xff]  }
  0x6f   :  { %1212 = vmatpush2.bf16.msra.mxu0 %v4299_v36  ;;  %v4350_v11 = vld [vmem:[#allocation7 + $0x4e4] ss:$16 sps:$4 sm:$0xff]   ;;  %v4348_v15 = vld [vmem:[#allocation7 + $0x4e0] ss:$16 sps:$4 sm:$0xff]   ;;  %v4441_v20 = vld [vmem:[#allocation7 + $0x10c] ss:$16 sps:$4 sm:$0xff]  }
  0x70   :  { %1253 = vmatpush2.bf16.msra.mxu1 %v4300_v37  ;;  %1213 = vmatprep.subr.bf16.mxu0 %v4301_v38  ;;  %v4356_v17 = vld [vmem:[#allocation7 + $0x4c4] ss:$16 sps:$4 sm:$0xff]   ;;  %v4354_v21 = vld [vmem:[#allocation7 + $0x4c0] ss:$16 sps:$4 sm:$0xff]   ;;  %v4375_v37 = vld [vmem:[#allocation7 + $0x68] ss:$16 sps:$4 sm:$0xff]  }
  0x71   :  { %1254 = vmatprep.subr.bf16.mxu1 %v4303_v39  ;;  %1227 = vmatprep.mubr.bf16.mxu0 %v3645_v61  ;;  %v4362_v24 = vld [vmem:[#allocation7 + $0x4a4] ss:$16 sps:$4 sm:$0xff]   ;;  %v4360_v29 = vld [vmem:[#allocation7 + $0x4a0] ss:$16 sps:$4 sm:$0xff]   ;;  %v4383_v39 = vld [vmem:[#allocation7 + $0x4c] ss:$16 sps:$4 sm:$0xff]  }
  0x72   :  { %v4368_v31 = vld [vmem:[#allocation7 + $0x484] ss:$16 sps:$4 sm:$0xff]   ;;  %v4366_v32 = vld [vmem:[#allocation7 + $0x480] ss:$16 sps:$4 sm:$0xff]   ;;  %v4442_v23 = vld [vmem:[#allocation7 + $0x208] ss:$16 sps:$4 sm:$0xff]  }
  0x73   :  { %1214 = vmatpush2.bf16.msra.mxu0 %v4305_v40  ;;  %v4374_v34 = vld [vmem:[#allocation7 + $0x464] ss:$16 sps:$4 sm:$0xff]   ;;  %v4372_v36 = vld [vmem:[#allocation7 + $0x460] ss:$16 sps:$4 sm:$0xff]   ;;  %v4445_v27 = vld [vmem:[#allocation7 + $0x3e8] ss:$16 sps:$4 sm:$0xff]  }
  0x74   :  { %1255 = vmatpush2.bf16.msra.mxu1 %v4306_v41  ;;  %1215 = vmatprep.subr.bf16.mxu0 %v4307_v42  ;;  %v4380_v38 = vld [vmem:[#allocation7 + $0x444] ss:$16 sps:$4 sm:$0xff]   ;;  %v4378_v40 = vld [vmem:[#allocation7 + $0x440] ss:$16 sps:$4 sm:$0xff]   ;;  %v4381_v41 = vld [vmem:[#allocation7 + $0x48] ss:$16 sps:$4 sm:$0xff]  }
  0x75   :  { %1256 = vmatprep.subr.bf16.mxu1 %v4309_v43  ;;  %v4386_v42 = vld [vmem:[#allocation7 + $0x424] ss:$16 sps:$4 sm:$0xff]   ;;  %v4389_v43 = vld [vmem:[#allocation7 + $0x2c] ss:$16 sps:$4 sm:$0xff]  }
  0x77   :  { %1216 = vmatpush2.bf16.msra.mxu0 %v4311_v44  ;;  %v4384_v44 = vld [vmem:[#allocation7 + $0x420] ss:$16 sps:$4 sm:$0xff]  }
  0x78   :  { %1257 = vmatpush2.bf16.msra.mxu1 %v4312_v45  ;;  %1217 = vmatprep.subr.bf16.mxu0 %v4313_v46  ;;  %v4387_v45 = vld [vmem:[#allocation7 + $0x28] ss:$16 sps:$4 sm:$0xff]   ;;  %v4392_v46 = vld [vmem:[#allocation7 + $0x404] ss:$16 sps:$4 sm:$0xff]  }
  0x79   :  { %1258 = vmatprep.subr.bf16.mxu1 %v4315_v47  ;;  %v4395_v47 = vld [vmem:[#allocation7 + $0xc] ss:$16 sps:$4 sm:$0xff]  }
  0x7b   :  { %1218 = vmatpush2.bf16.msra.mxu0 %v4317_v48  ;;  %v4390_v48 = vld [vmem:[#allocation7 + $0x400] ss:$16 sps:$4 sm:$0xff]  }
  0x7c   :  { %1259 = vmatpush2.bf16.msra.mxu1 %v4318_v49  ;;  %1219 = vmatprep.subr.bf16.mxu0 %v4319_v52  ;;  %v4393_v49 = vld [vmem:[#allocation7 + $0x8] ss:$16 sps:$4 sm:$0xff]  }
  0x7d   :  { %1260 = vmatprep.subr.bf16.mxu1 %v4321_v53  ;;  %v4397_v52 = vld [vmem:[#allocation7 + $0x1e8] ss:$16 sps:$4 sm:$0xff]   ;;  %v5089_v53 = vld [vmem:[#allocation17 + $0x10] ss:$0 sps:$4 sm:$0xff]  }
  0x7f   :  { %1220 = vmatpush2.bf16.msra.mxu0 %v4323_v55  ;;  %v4400_v55 = vld [vmem:[#allocation7 + $0x2e8] ss:$16 sps:$4 sm:$0xff]  }
  0x80   :  { %1261 = vmatpush2.bf16.msra.mxu1 %v4324_v56  ;;  %1221 = vmatprep.subr.bf16.mxu0 %v4325_v57  ;;  %v4405_v56 = vld [vmem:[#allocation7 + $0x1cc] ss:$16 sps:$4 sm:$0xff]  }
  0x81   :  { %1262 = vmatprep.subr.bf16.mxu1 %v4327_v58  ;;  %v4408_v57 = vld [vmem:[#allocation7 + $0x2cc] ss:$16 sps:$4 sm:$0xff]   ;;  %v4403_v58 = vld [vmem:[#allocation7 + $0x1c8] ss:$16 sps:$4 sm:$0xff]  }
  0x83   :  { %1222 = vmatpush2.bf16.msra.mxu0 %v4329_v60  ;;  %v4411_v60 = vld [vmem:[#allocation7 + $0x1ac] ss:$16 sps:$4 sm:$0xff]  }
  0x84   :  { %1263 = vmatpush2.bf16.msra.mxu1 %v4330_v62  ;;  %1223 = vmatprep.subr.bf16.mxu0 %v4331_v0  ;;  %v4409_v62 = vld [vmem:[#allocation7 + $0x1a8] ss:$16 sps:$4 sm:$0xff]  }
  0x85   :  { %1264 = vmatprep.subr.bf16.mxu1 %v4333_v2  ;;  %v4412_v0 = vld [vmem:[#allocation7 + $0x2a8] ss:$16 sps:$4 sm:$0xff]   ;;  %v4417_v2 = vld [vmem:[#allocation7 + $0x18c] ss:$16 sps:$4 sm:$0xff]  }
  0x87   :  { %1224 = vmatpush2.bf16.msra.mxu0 %v4335_v3  ;;  %v4420_v3 = vld [vmem:[#allocation7 + $0x28c] ss:$16 sps:$4 sm:$0xff]  }
  0x88   :  { %1265 = vmatpush2.bf16.msra.mxu1 %v4336_v4  ;;  %1225 = vmatprep.subr.bf16.mxu0 %v4337_v6  ;;  %v4415_v4 = vld [vmem:[#allocation7 + $0x188] ss:$16 sps:$4 sm:$0xff]  }
  0x89   :  { %1266 = vmatprep.subr.bf16.mxu1 %v4339_v7  ;;  %v4418_v6 = vld [vmem:[#allocation7 + $0x288] ss:$16 sps:$4 sm:$0xff]   ;;  %v4423_v7 = vld [vmem:[#allocation7 + $0x16c] ss:$16 sps:$4 sm:$0xff]  }
  0x8b   :  { %1226 = vmatpush2.bf16.msra.mxu0 %v4341_v8  ;;  %v4426_v8 = vld [vmem:[#allocation7 + $0x26c] ss:$16 sps:$4 sm:$0xff]  }
  0x8c   :  { %1267 = vmatpush2.bf16.msra.mxu1 %v4342_v9  ;;  %1277 = vmatprep.subr.bf16.mxu0 %v4350_v11  ;;  %v4421_v9 = vld [vmem:[#allocation7 + $0x168] ss:$16 sps:$4 sm:$0xff]   ;;  %v4432_v11 = vld [vmem:[#allocation7 + $0x24c] ss:$16 sps:$4 sm:$0xff]  }
  0x8d   :  { %1318 = vmatprep.subr.bf16.mxu1 %v4353_v12  ;;  %v4427_v12 = vld [vmem:[#allocation7 + $0x148] ss:$16 sps:$4 sm:$0xff]  }
  0x8e   :  { %1228 = vmatmul.mubr.bf16.vlgmr.msra.gmra.mxu0 %v5077_v13 }
  0x8f   :  { %1269 = vmatmul.mubr.bf16.vlgmr.msra.gmra.mxu1 %v5079_v14  ;;  %1278 = vmatpush1.bf16.msra.mxu0 %v4348_v15  ;;  %v4430_v15 = vld [vmem:[#allocation7 + $0x248] ss:$16 sps:$4 sm:$0xff]  }
  0x90   :  { %1319 = vmatpush1.bf16.msra.mxu1 %v4351_v16  ;;  %1279 = vmatprep.subr.bf16.mxu0 %v4356_v17  ;;  %v4435_v16 = vld [vmem:[#allocation7 + $0x12c] ss:$16 sps:$4 sm:$0xff]  }
  0x91   :  { %1320 = vmatprep.subr.bf16.mxu1 %v4359_v18  ;;  %1309 = vmatprep.mubr.bf16.mxu0 %v4988_v28  ;;  %v4438_v17 = vld [vmem:[#allocation7 + $0x22c] ss:$16 sps:$4 sm:$0xff]   ;;  %v4433_v18 = vld [vmem:[#allocation7 + $0x128] ss:$16 sps:$4 sm:$0xff]  }
  0x92   :  { %1350 = vmatprep.mubr.bf16.mxu1 %v3645_v61  ;;  %v4414_v61 = vld [vmem:[#allocation7 + $0x2ac] ss:$16 sps:$4 sm:$0xff]  }
  0x93   :  { %1280 = vmatpush1.bf16.msra.mxu0 %v4354_v21  ;;  %v4444_v21 = vld [vmem:[#allocation7 + $0x20c] ss:$16 sps:$4 sm:$0xff]  }
  0x94   :  { %1321 = vmatpush1.bf16.msra.mxu1 %v4357_v22  ;;  %1281 = vmatprep.subr.bf16.mxu0 %v4362_v24  ;;  %v4439_v22 = vld [vmem:[#allocation7 + $0x108] ss:$16 sps:$4 sm:$0xff]   ;;  %v4447_v24 = vld [vmem:[#allocation7 + $0x3ec] ss:$16 sps:$4 sm:$0xff]  }
  0x95   :  { %1322 = vmatprep.subr.bf16.mxu1 %v4365_v25  ;;  %v4450_v25 = vld [vmem:[#allocation7 + $0x4ec] ss:$16 sps:$4 sm:$0xff]  }
  0x97   :  { %1282 = vmatpush1.bf16.msra.mxu0 %v4360_v29  ;;  %v4448_v29 = vld [vmem:[#allocation7 + $0x4e8] ss:$16 sps:$4 sm:$0xff]  }
  0x98   :  { %1323 = vmatpush1.bf16.msra.mxu1 %v4363_v30  ;;  %1283 = vmatprep.subr.bf16.mxu0 %v4368_v31  ;;  %v4453_v30 = vld [vmem:[#allocation7 + $0x3cc] ss:$16 sps:$4 sm:$0xff]  }
  0x99   :  { %1324 = vmatprep.subr.bf16.mxu1 %v4371_v1  ;;  %v4456_v31 = vld [vmem:[#allocation7 + $0x4cc] ss:$16 sps:$4 sm:$0xff]   ;;  %v4451_v1 = vld [vmem:[#allocation7 + $0x3c8] ss:$16 sps:$4 sm:$0xff]  }
  0x9b   :  { %1284 = vmatpush1.bf16.msra.mxu0 %v4366_v32  ;;  %v4454_v32 = vld [vmem:[#allocation7 + $0x4c8] ss:$16 sps:$4 sm:$0xff]  }
  0x9c   :  { %1325 = vmatpush1.bf16.msra.mxu1 %v4369_v33  ;;  %1285 = vmatprep.subr.bf16.mxu0 %v4374_v34  ;;  %v4459_v33 = vld [vmem:[#allocation7 + $0x3ac] ss:$16 sps:$4 sm:$0xff]  }
  0x9d   :  { %1326 = vmatprep.subr.bf16.mxu1 %v4377_v35  ;;  %v4462_v34 = vld [vmem:[#allocation7 + $0x4ac] ss:$16 sps:$4 sm:$0xff]   ;;  %v4457_v35 = vld [vmem:[#allocation7 + $0x3a8] ss:$16 sps:$4 sm:$0xff]  }
  0x9f   :  { %1286 = vmatpush1.bf16.msra.mxu0 %v4372_v36  ;;  %v4460_v36 = vld [vmem:[#allocation7 + $0x4a8] ss:$16 sps:$4 sm:$0xff]  }
  0xa0   :  { %1327 = vmatpush1.bf16.msra.mxu1 %v4375_v37  ;;  %1287 = vmatprep.subr.bf16.mxu0 %v4380_v38  ;;  %v4465_v37 = vld [vmem:[#allocation7 + $0x38c] ss:$16 sps:$4 sm:$0xff]  }
  0xa1   :  { %1328 = vmatprep.subr.bf16.mxu1 %v4383_v39  ;;  %v4468_v38 = vld [vmem:[#allocation7 + $0x48c] ss:$16 sps:$4 sm:$0xff]   ;;  %v4463_v39 = vld [vmem:[#allocation7 + $0x388] ss:$16 sps:$4 sm:$0xff]  }
  0xa3   :  { %1288 = vmatpush1.bf16.msra.mxu0 %v4378_v40  ;;  %v4471_v40 = vld [vmem:[#allocation7 + $0x36c] ss:$16 sps:$4 sm:$0xff]  }
  0xa4   :  { %1329 = vmatpush1.bf16.msra.mxu1 %v4381_v41  ;;  %1289 = vmatprep.subr.bf16.mxu0 %v4386_v42  ;;  %v4474_v41 = vld [vmem:[#allocation7 + $0x46c] ss:$16 sps:$4 sm:$0xff]   ;;  %v4469_v42 = vld [vmem:[#allocation7 + $0x368] ss:$16 sps:$4 sm:$0xff]  }
  0xa5   :  { %1330 = vmatprep.subr.bf16.mxu1 %v4389_v43  ;;  %v4472_v43 = vld [vmem:[#allocation7 + $0x468] ss:$16 sps:$4 sm:$0xff]  }
  0xa7   :  { %1290 = vmatpush1.bf16.msra.mxu0 %v4384_v44  ;;  %v4477_v44 = vld [vmem:[#allocation7 + $0x34c] ss:$16 sps:$4 sm:$0xff]  }
  0xa8   :  { %1331 = vmatpush1.bf16.msra.mxu1 %v4387_v45  ;;  %1291 = vmatprep.subr.bf16.mxu0 %v4392_v46  ;;  %v4480_v45 = vld [vmem:[#allocation7 + $0x44c] ss:$16 sps:$4 sm:$0xff]   ;;  %v4478_v46 = vld [vmem:[#allocation7 + $0x448] ss:$16 sps:$4 sm:$0xff]  }
  0xa9   :  { %1332 = vmatprep.subr.bf16.mxu1 %v4395_v47  ;;  %v4483_v47 = vld [vmem:[#allocation7 + $0x32c] ss:$16 sps:$4 sm:$0xff]  }
  0xab   :  { %1292 = vmatpush1.bf16.msra.mxu0 %v4390_v48  ;;  %v4486_v48 = vld [vmem:[#allocation7 + $0x42c] ss:$16 sps:$4 sm:$0xff]  }
  0xac   :  { %1333 = vmatpush1.bf16.msra.mxu1 %v4393_v49  ;;  %1359 = vmatprep.subr.bf16.mxu0 %v4402_v51  ;;  %v4481_v49 = vld [vmem:[#allocation7 + $0x328] ss:$16 sps:$4 sm:$0xff]   ;;  %v4489_v51 = vld [vmem:[#allocation7 + $0x30c] ss:$16 sps:$4 sm:$0xff]  }
  0xad   :  { %1334 = vmatprep.subr.bf16.mxu1 %v4399_v50  ;;  %v4484_v50 = vld [vmem:[#allocation7 + $0x428] ss:$16 sps:$4 sm:$0xff]  }
  0xae   :  { %1310 = vmatmul.mubr.bf16.vlgmr.msra.gmra.mxu0 %v5089_v53 }
  0xaf   :  { %1360 = vmatpush1.bf16.msra.mxu0 %v4400_v55  ;;  %1391 = vmatprep.mubr.bf16.mxu0 %v5070_v54  ;;  %v4429_v54 = vld [vmem:[#allocation7 + $0x14c] ss:$16 sps:$4 sm:$0xff]   ;;  %v4487_v55 = vld [vmem:[#allocation7 + $0x308] ss:$16 sps:$4 sm:$0xff]  }
  0xb0   :  { %1335 = vmatpush2.bf16.msra.mxu1 %v4397_v52  ;;  %1361 = vmatprep.subr.bf16.mxu0 %v4408_v57  ;;  %v4492_v52 = vld [vmem:[#allocation7 + $0x40c] ss:$16 sps:$4 sm:$0xff]   ;;  %v4495_v57 = vld [vmem:[#allocation9 + $0xe4] ss:$16 sps:$4 sm:$0xff]  }
  0xb1   :  { %1336 = vmatprep.subr.bf16.mxu1 %v4405_v56  ;;  %v4490_v56 = vld [vmem:[#allocation7 + $0x408] ss:$16 sps:$4 sm:$0xff]  }
  0xb3   :  { %1362 = vmatpush1.bf16.msra.mxu0 %v4406_v59  ;;  %v4498_v59 = vld [vmem:[#allocation9 + $0xc4] ss:$16 sps:$4 sm:$0xff]  }
  0xb4   :  { %1337 = vmatpush2.bf16.msra.mxu1 %v4403_v58  ;;  %1363 = vmatprep.subr.bf16.mxu0 %v4414_v61  ;;  %v4493_v58 = vld [vmem:[#allocation9 + $0xe0] ss:$16 sps:$4 sm:$0xff]   ;;  %v4501_v61 = vld [vmem:[#allocation9 + $0xa4] ss:$16 sps:$4 sm:$0xff]  }
  0xb5   :  { %1338 = vmatprep.subr.bf16.mxu1 %v4411_v60  ;;  %v4496_v60 = vld [vmem:[#allocation9 + $0xc0] ss:$16 sps:$4 sm:$0xff]  }
  0xb7   :  { %1364 = vmatpush1.bf16.msra.mxu0 %v4412_v0  ;;  %v4504_v0 = vld [vmem:[#allocation9 + $0x84] ss:$16 sps:$4 sm:$0xff]  }
  0xb8   :  { %1339 = vmatpush2.bf16.msra.mxu1 %v4409_v62  ;;  %1365 = vmatprep.subr.bf16.mxu0 %v4420_v3  ;;  %v4499_v62 = vld [vmem:[#allocation9 + $0xa0] ss:$16 sps:$4 sm:$0xff]   ;;  %v4507_v3 = vld [vmem:[#allocation9 + $0x64] ss:$16 sps:$4 sm:$0xff]  }
  0xb9   :  { %1340 = vmatprep.subr.bf16.mxu1 %v4417_v2  ;;  %v4502_v2 = vld [vmem:[#allocation9 + $0x80] ss:$16 sps:$4 sm:$0xff]  }
  0xbb   :  { %1366 = vmatpush1.bf16.msra.mxu0 %v4418_v6  ;;  %v4505_v6 = vld [vmem:[#allocation9 + $0x60] ss:$16 sps:$4 sm:$0xff]  }
  0xbc   :  { %1341 = vmatpush2.bf16.msra.mxu1 %v4415_v4  ;;  %1367 = vmatprep.subr.bf16.mxu0 %v4426_v8  ;;  %v4546_v4 = vld [vmem:[#allocation9 + $0x2e4] ss:$16 sps:$4 sm:$0xff]  }
  0xbd   :  { %1342 = vmatprep.subr.bf16.mxu1 %v4423_v7  ;;  %v4544_v7 = vld [vmem:[#allocation9 + $0x2e0] ss:$16 sps:$4 sm:$0xff]   ;;  %v4510_v8 = vld [vmem:[#allocation9 + $0x44] ss:$16 sps:$4 sm:$0xff]  }
  0xbf   :  { %1368 = vmatpush1.bf16.msra.mxu0 %v4424_v10  ;;  %v4513_v10 = vld [vmem:[#allocation9 + $0x24] ss:$16 sps:$4 sm:$0xff]  }
  0xc0   :  { %1343 = vmatpush2.bf16.msra.mxu1 %v4421_v9  ;;  %1369 = vmatprep.subr.bf16.mxu0 %v4432_v11  ;;  %v4550_v9 = vld [vmem:[#allocation9 + $0x2c0] ss:$16 sps:$4 sm:$0xff]  }
  0xc1   :  { %1344 = vmatprep.subr.bf16.mxu1 %v4429_v54  ;;  %v4558_v54 = vld [vmem:[#allocation9 + $0x2a4] ss:$16 sps:$4 sm:$0xff]   ;;  %v4511_v11 = vld [vmem:[#allocation9 + $0x20] ss:$16 sps:$4 sm:$0xff]  }
  0xc3   :  { %1370 = vmatpush1.bf16.msra.mxu0 %v4430_v15  ;;  %v4516_v15 = vld [vmem:[#allocation9 + $0x4] ss:$16 sps:$4 sm:$0xff]  }
  0xc4   :  { %1345 = vmatpush2.bf16.msra.mxu1 %v4427_v12  ;;  %1371 = vmatprep.subr.bf16.mxu0 %v4438_v17  ;;  %v4556_v12 = vld [vmem:[#allocation9 + $0x2a0] ss:$16 sps:$4 sm:$0xff]  }
  0xc5   :  { %1346 = vmatprep.subr.bf16.mxu1 %v4435_v16  ;;  %v4564_v16 = vld [vmem:[#allocation9 + $0x284] ss:$16 sps:$4 sm:$0xff]   ;;  %v4514_v17 = vld [vmem:[#allocation9] ss:$16 sps:$4 sm:$0xff]  }
  0xc7   :  { %1372 = vmatpush1.bf16.msra.mxu0 %v4436_v19  ;;  %v4519_v19 = vld [vmem:[#allocation9 + $0x1e4] ss:$16 sps:$4 sm:$0xff]  }
  0xc8   :  { %1347 = vmatpush2.bf16.msra.mxu1 %v4433_v18  ;;  %1373 = vmatprep.subr.bf16.mxu0 %v4444_v21  ;;  %v4562_v18 = vld [vmem:[#allocation9 + $0x280] ss:$16 sps:$4 sm:$0xff]  }
  0xc9   :  { %1348 = vmatprep.subr.bf16.mxu1 %v4441_v20  ;;  %v4570_v20 = vld [vmem:[#allocation9 + $0x264] ss:$16 sps:$4 sm:$0xff]   ;;  %v4517_v21 = vld [vmem:[#allocation9 + $0x1e0] ss:$16 sps:$4 sm:$0xff]  }
  0xcb   :  { %1374 = vmatpush1.bf16.msra.mxu0 %v4442_v23  ;;  %v4522_v23 = vld [vmem:[#allocation9 + $0x1c4] ss:$16 sps:$4 sm:$0xff]  }
  0xcc   :  { %1349 = vmatpush2.bf16.msra.mxu1 %v4439_v22  ;;  %1375 = vmatprep.subr.bf16.mxu0 %v4447_v24  ;;  %v4568_v22 = vld [vmem:[#allocation9 + $0x260] ss:$16 sps:$4 sm:$0xff]   ;;  %v4576_v24 = vld [vmem:[#allocation9 + $0x244] ss:$16 sps:$4 sm:$0xff]  }
  0xcd   :  { %1400 = vmatprep.subr.bf16.mxu1 %v4450_v25  ;;  %v4574_v25 = vld [vmem:[#allocation9 + $0x240] ss:$16 sps:$4 sm:$0xff]  }
  0xcf   :  { %1351 = vmatmul.mubr.bf16.vlgmr.msra.gmra.mxu1 %v5077_v13  ;;  %1376 = vmatpush2.bf16.msra.mxu0 %v4445_v27  ;;  %v4466_v13 = vld [vmem:[#allocation7 + $0x488] ss:$16 sps:$4 sm:$0xff]   ;;  %v4520_v27 = vld [vmem:[#allocation9 + $0x1c0] ss:$16 sps:$4 sm:$0xff]  }
  0xd0   :  { %1401 = vmatpush1.bf16.msra.mxu1 %v4448_v29  ;;  %1377 = vmatprep.subr.bf16.mxu0 %v4453_v30  ;;  %v4525_v29 = vld [vmem:[#allocation9 + $0x1a4] ss:$16 sps:$4 sm:$0xff]  }
  0xd1   :  { %1402 = vmatprep.subr.bf16.mxu1 %v4456_v31  ;;  %1432 = vmatprep.mubr.bf16.mxu1 %v4988_v28  ;;  %v4475_v28 = vld [vmem:[#allocation7 + $0x348] ss:$16 sps:$4 sm:$0xff]   ;;  %v4582_v30 = vld [vmem:[#allocation9 + $0x224] ss:$16 sps:$4 sm:$0xff]   ;;  %v4580_v31 = vld [vmem:[#allocation9 + $0x220] ss:$16 sps:$4 sm:$0xff]  }
  0xd3   :  { %1378 = vmatpush2.bf16.msra.mxu0 %v4451_v1  ;;  %v4523_v1 = vld [vmem:[#allocation9 + $0x1a0] ss:$16 sps:$4 sm:$0xff]  }
  0xd4   :  { %1403 = vmatpush1.bf16.msra.mxu1 %v4454_v32  ;;  %1379 = vmatprep.subr.bf16.mxu0 %v4459_v33  ;;  %v4528_v32 = vld [vmem:[#allocation9 + $0x184] ss:$16 sps:$4 sm:$0xff]  }
  0xd5   :  { %1404 = vmatprep.subr.bf16.mxu1 %v4462_v34  ;;  %v4588_v33 = vld [vmem:[#allocation9 + $0x204] ss:$16 sps:$4 sm:$0xff]   ;;  %v4526_v34 = vld [vmem:[#allocation9 + $0x180] ss:$16 sps:$4 sm:$0xff]  }
  0xd7   :  { %1380 = vmatpush2.bf16.msra.mxu0 %v4457_v35  ;;  %v4586_v35 = vld [vmem:[#allocation9 + $0x200] ss:$16 sps:$4 sm:$0xff]  }
  0xd8   :  { %1405 = vmatpush1.bf16.msra.mxu1 %v4460_v36  ;;  %1381 = vmatprep.subr.bf16.mxu0 %v4465_v37  ;;  %v4531_v36 = vld [vmem:[#allocation9 + $0x164] ss:$16 sps:$4 sm:$0xff]  }
  0xd9   :  { %1406 = vmatprep.subr.bf16.mxu1 %v4468_v38  ;;  %v4594_v37 = vld [vmem:[#allocation9 + $0x3e4] ss:$16 sps:$4 sm:$0xff]   ;;  %v4529_v38 = vld [vmem:[#allocation9 + $0x160] ss:$16 sps:$4 sm:$0xff]  }
  0xdb   :  { %1382 = vmatpush2.bf16.msra.mxu0 %v4463_v39  ;;  %v4592_v39 = vld [vmem:[#allocation9 + $0x3e0] ss:$16 sps:$4 sm:$0xff]  }
  0xdc   :  { %1407 = vmatpush1.bf16.msra.mxu1 %v4466_v13  ;;  %1383 = vmatprep.subr.bf16.mxu0 %v4471_v40  ;;  %v4534_v13 = vld [vmem:[#allocation9 + $0x144] ss:$16 sps:$4 sm:$0xff]  }
  0xdd   :  { %1408 = vmatprep.subr.bf16.mxu1 %v4474_v41  ;;  %v4600_v40 = vld [vmem:[#allocation9 + $0x3c4] ss:$16 sps:$4 sm:$0xff]   ;;  %v4532_v41 = vld [vmem:[#allocation9 + $0x140] ss:$16 sps:$4 sm:$0xff]  }
  0xdf   :  { %1384 = vmatpush2.bf16.msra.mxu0 %v4469_v42  ;;  %v4598_v42 = vld [vmem:[#allocation9 + $0x3c0] ss:$16 sps:$4 sm:$0xff]  }
  0xe0   :  { %1409 = vmatpush1.bf16.msra.mxu1 %v4472_v43  ;;  %1385 = vmatprep.subr.bf16.mxu0 %v4477_v44  ;;  %v4537_v43 = vld [vmem:[#allocation9 + $0x124] ss:$16 sps:$4 sm:$0xff]  }
  0xe1   :  { %1410 = vmatprep.subr.bf16.mxu1 %v4480_v45  ;;  %v4606_v44 = vld [vmem:[#allocation9 + $0x3a4] ss:$16 sps:$4 sm:$0xff]   ;;  %v4535_v45 = vld [vmem:[#allocation9 + $0x120] ss:$16 sps:$4 sm:$0xff]  }
  0xe3   :  { %1386 = vmatpush2.bf16.msra.mxu0 %v4475_v28  ;;  %v4604_v28 = vld [vmem:[#allocation9 + $0x3a0] ss:$16 sps:$4 sm:$0xff]  }
  0xe4   :  { %1411 = vmatpush1.bf16.msra.mxu1 %v4478_v46  ;;  %1387 = vmatprep.subr.bf16.mxu0 %v4483_v47  ;;  %v4540_v46 = vld [vmem:[#allocation9 + $0x104] ss:$16 sps:$4 sm:$0xff]  }
  0xe5   :  { %1412 = vmatprep.subr.bf16.mxu1 %v4486_v48  ;;  %v4612_v47 = vld [vmem:[#allocation9 + $0x384] ss:$16 sps:$4 sm:$0xff]   ;;  %v4538_v48 = vld [vmem:[#allocation9 + $0x100] ss:$16 sps:$4 sm:$0xff]  }
  0xe7   :  { %1388 = vmatpush2.bf16.msra.mxu0 %v4481_v49  ;;  %v4610_v49 = vld [vmem:[#allocation9 + $0x380] ss:$16 sps:$4 sm:$0xff]  }
  0xe8   :  { %1413 = vmatpush1.bf16.msra.mxu1 %v4484_v50  ;;  %1389 = vmatprep.subr.bf16.mxu0 %v4489_v51  ;;  %v4543_v50 = vld [vmem:[#allocation9 + $0xec] ss:$16 sps:$4 sm:$0xff]   ;;  %v4618_v51 = vld [vmem:[#allocation9 + $0x364] ss:$16 sps:$4 sm:$0xff]  }
  0xe9   :  { %1414 = vmatprep.subr.bf16.mxu1 %v4492_v52  ;;  %v4616_v52 = vld [vmem:[#allocation9 + $0x360] ss:$16 sps:$4 sm:$0xff]  }
  0xeb   :  { %1390 = vmatpush2.bf16.msra.mxu0 %v4487_v55  ;;  %v4624_v55 = vld [vmem:[#allocation9 + $0x344] ss:$16 sps:$4 sm:$0xff]  }
  0xec   :  { %1415 = vmatpush1.bf16.msra.mxu1 %v4490_v56  ;;  %2240 = vmatprep.subr.bf16.mxu0 %v4495_v57  ;;  %v4622_v56 = vld [vmem:[#allocation9 + $0x340] ss:$16 sps:$4 sm:$0xff]   ;;  %v4630_v57 = vld [vmem:[#allocation9 + $0x324] ss:$16 sps:$4 sm:$0xff]  }
  0xed   :  { %2281 = vmatprep.subr.bf16.mxu1 %v4546_v4 }
  0xee   :  { %1392 = vmatmul.mubr.bf16.vlgmr.msra.gmra.mxu0 %v5079_v14  ;;  %v4552_v14 = vld [vmem:[#allocation9 + $0x2c4] ss:$16 sps:$4 sm:$0xff]  }
  0xef   :  { %1433 = vmatmul.mubr.bf16.vlgmr.msra.gmra.mxu1 %v5089_v53  ;;  %2241 = vmatpush1.bf16.msra.mxu0 %v4493_v58  ;;  %v4508_v53 = vld [vmem:[#allocation9 + $0x40] ss:$16 sps:$4 sm:$0xff]  }
  0xf0   :  { %2242 = vmatprep.subr.bf16.mxu0 %v4498_v59  ;;  %2282 = vmatpush1.bf16.msra.mxu1 %v4544_v7  ;;  %v4628_v58 = vld [vmem:[#allocation9 + $0x320] ss:$16 sps:$4 sm:$0xff]   ;;  %v4636_v59 = vld [vmem:[#allocation9 + $0x304] ss:$16 sps:$4 sm:$0xff]  }
  0xf1   :  { %2283 = vmatprep.subr.bf16.mxu1 %v4552_v14  ;;  %v5098_v14 = vshrl.u32 %v181_v63, 7 }
  0xf3   :  { %2243 = vmatpush1.bf16.msra.mxu0 %v4496_v60  ;;  %v4634_v60 = vld [vmem:[#allocation9 + $0x300] ss:$16 sps:$4 sm:$0xff]  }
  0xf4   :  { %2244 = vmatprep.subr.bf16.mxu0 %v4501_v61  ;;  %2284 = vmatpush1.bf16.msra.mxu1 %v4550_v9  ;;  %v4639_v61 = vld [vmem:[#allocation9 + $0x2ec] ss:$16 sps:$4 sm:$0xff]   ;;  %v5103_v9 = vld [vmem:[#allocation15] ss:$8 sm:$0xf] }
  0xf5   :  { %2285 = vmatprep.subr.bf16.mxu1 %v4558_v54 }
  0xf7   :  { %2245 = vmatpush1.bf16.msra.mxu0 %v4499_v62 }
  0xf8   :  { %2246 = vmatprep.subr.bf16.mxu0 %v4504_v0  ;;  %2286 = vmatpush1.bf16.msra.mxu1 %v4556_v12 }
  0xf9   :  { %2287 = vmatprep.subr.bf16.mxu1 %v4564_v16 }
  0xfb   :  { %2247 = vmatpush1.bf16.msra.mxu0 %v4502_v2 }
  0xfc   :  { %2248 = vmatprep.subr.bf16.mxu0 %v4507_v3  ;;  %2288 = vmatpush1.bf16.msra.mxu1 %v4562_v18 }
  0xfd   :  { %2289 = vmatprep.subr.bf16.mxu1 %v4570_v20 }
  0xff   :  { %2249 = vmatpush1.bf16.msra.mxu0 %v4505_v6 }
 0x100   :  { %2250 = vmatprep.subr.bf16.mxu0 %v4510_v8  ;;  %2290 = vmatpush1.bf16.msra.mxu1 %v4568_v22 }
 0x101   :  { %2291 = vmatprep.subr.bf16.mxu1 %v4576_v24 }
 0x103   :  { %2251 = vmatpush1.bf16.msra.mxu0 %v4508_v53  ;;  %v5101_v53 = vsub.s32 0, %v5098_v14 }
 0x104   :  { %2252 = vmatprep.subr.bf16.mxu0 %v4513_v10  ;;  %2292 = vmatpush1.bf16.msra.mxu1 %v4574_v25  ;;  %v5106_v10 = vsub.s32 1, %v5098_v14 }
 0x105   :  { %2293 = vmatprep.subr.bf16.mxu1 %v4582_v30  ;;  %v360_v54 = vrot.slane %v5103_v9, %v5101_v53  ;;  %v4549_v30 = vld [vmem:[#allocation9 + $0xcc] ss:$16 sps:$4 sm:$0xff]  }
 0x107   :  { %2253 = vmatpush1.bf16.msra.mxu0 %v4511_v11  ;;  %v364_v11 = vrot.slane %v5103_v9, %v5106_v10 }
 0x108   :  { %2254 = vmatprep.subr.bf16.mxu0 %v4516_v15  ;;  %2294 = vmatpush1.bf16.msra.mxu1 %v4580_v31  ;;  %v4547_v31 = vld [vmem:[#allocation9 + $0xc8] ss:$16 sps:$4 sm:$0xff]  }
 0x109   :  { %2295 = vmatprep.subr.bf16.mxu1 %v4588_v33  ;;  %v4561_v33 = vld [vmem:[#allocation9 + $0x8c] ss:$16 sps:$4 sm:$0xff]  }
 0x10b   :  { %2255 = vmatpush1.bf16.msra.mxu0 %v4514_v17 }
 0x10c   :  { %2256 = vmatprep.subr.bf16.mxu0 %v4519_v19  ;;  %2296 = vmatpush1.bf16.msra.mxu1 %v4586_v35  ;;  %v4567_v35 = vld [vmem:[#allocation9 + $0x6c] ss:$16 sps:$4 sm:$0xff]  }
 0x10d   :  { %2297 = vmatprep.subr.bf16.mxu1 %v4594_v37  ;;  %v4573_v37 = vld [vmem:[#allocation9 + $0x4c] ss:$16 sps:$4 sm:$0xff]  }
 0x10f   :  { %2257 = vmatpush2.bf16.msra.mxu0 %v4517_v21 }
 0x110   :  { %2258 = vmatprep.subr.bf16.mxu0 %v4522_v23  ;;  %2298 = vmatpush2.bf16.msra.mxu1 %v4592_v39  ;;  %v4579_v39 = vld [vmem:[#allocation9 + $0x2c] ss:$16 sps:$4 sm:$0xff]  }
 0x111   :  { %2299 = vmatprep.subr.bf16.mxu1 %v4600_v40 }
 0x113   :  { %2259 = vmatpush2.bf16.msra.mxu0 %v4520_v27  ;;  %v4541_v27 = vld [vmem:[#allocation9 + $0xe8] ss:$16 sps:$4 sm:$0xff]  }
 0x114   :  { %2260 = vmatprep.subr.bf16.mxu0 %v4525_v29  ;;  %2300 = vmatpush2.bf16.msra.mxu1 %v4598_v42 }
 0x115   :  { %2301 = vmatprep.subr.bf16.mxu1 %v4606_v44 }
 0x117   :  { %2261 = vmatpush2.bf16.msra.mxu0 %v4523_v1  ;;  %v4555_v1 = vld [vmem:[#allocation9 + $0xac] ss:$16 sps:$4 sm:$0xff]  }
 0x118   :  { %2262 = vmatprep.subr.bf16.mxu0 %v4528_v32  ;;  %2302 = vmatpush2.bf16.msra.mxu1 %v4604_v28  ;;  %v4553_v32 = vld [vmem:[#allocation9 + $0xa8] ss:$16 sps:$4 sm:$0xff]  }
 0x119   :  { %2303 = vmatprep.subr.bf16.mxu1 %v4612_v47  ;;  %v4597_v47 = vld [vmem:[#allocation9 + $0x1cc] ss:$16 sps:$4 sm:$0xff]  }
 0x11b   :  { %2263 = vmatpush2.bf16.msra.mxu0 %v4526_v34  ;;  %v4559_v34 = vld [vmem:[#allocation9 + $0x88] ss:$16 sps:$4 sm:$0xff]  }
 0x11c   :  { %2264 = vmatprep.subr.bf16.mxu0 %v4531_v36  ;;  %2304 = vmatpush2.bf16.msra.mxu1 %v4610_v49  ;;  %v4565_v36 = vld [vmem:[#allocation9 + $0x68] ss:$16 sps:$4 sm:$0xff]   ;;  %v4603_v49 = vld [vmem:[#allocation9 + $0x1ac] ss:$16 sps:$4 sm:$0xff]  }
 0x11d   :  { %2305 = vmatprep.subr.bf16.mxu1 %v4618_v51  ;;  %v4609_v51 = vld [vmem:[#allocation9 + $0x18c] ss:$16 sps:$4 sm:$0xff]  }
 0x11f   :  { %2265 = vmatpush2.bf16.msra.mxu0 %v4529_v38  ;;  %v4571_v38 = vld [vmem:[#allocation9 + $0x48] ss:$16 sps:$4 sm:$0xff]  }
 0x120   :  { %2266 = vmatprep.subr.bf16.mxu0 %v4534_v13  ;;  %2306 = vmatpush2.bf16.msra.mxu1 %v4616_v52  ;;  %v4577_v13 = vld [vmem:[#allocation9 + $0x28] ss:$16 sps:$4 sm:$0xff]  }
 0x121   :  { %2307 = vmatprep.subr.bf16.mxu1 %v4624_v55  ;;  %v4607_v52 = vld [vmem:[#allocation9 + $0x188] ss:$16 sps:$4 sm:$0xff]   ;;  %v4615_v55 = vld [vmem:[#allocation9 + $0x16c] ss:$16 sps:$4 sm:$0xff]  }
 0x123   :  { %2267 = vmatpush2.bf16.msra.mxu0 %v4532_v41  ;;  %v4585_v41 = vld [vmem:[#allocation9 + $0xc] ss:$16 sps:$4 sm:$0xff]  }
 0x124   :  { %2268 = vmatprep.subr.bf16.mxu0 %v4537_v43  ;;  %2308 = vmatpush2.bf16.msra.mxu1 %v4622_v56  ;;  %v4583_v43 = vld [vmem:[#allocation9 + $0x8] ss:$16 sps:$4 sm:$0xff]   ;;  %v367_v56 = vsub.s32 2, %v5098_v14 }
 0x125   :  { %2309 = vmatprep.subr.bf16.mxu1 %v4630_v57  ;;  %v4613_v57 = vld [vmem:[#allocation9 + $0x168] ss:$16 sps:$4 sm:$0xff]  }
 0x127   :  { %2269 = vmatpush2.bf16.msra.mxu0 %v4535_v45  ;;  %v4591_v45 = vld [vmem:[#allocation9 + $0x1ec] ss:$16 sps:$4 sm:$0xff]  }
 0x128   :  { %2270 = vmatprep.subr.bf16.mxu0 %v4540_v46  ;;  %2310 = vmatpush2.bf16.msra.mxu1 %v4628_v58  ;;  %v4589_v46 = vld [vmem:[#allocation9 + $0x1e8] ss:$16 sps:$4 sm:$0xff]   ;;  %v4621_v58 = vld [vmem:[#allocation9 + $0x14c] ss:$16 sps:$4 sm:$0xff]  }
 0x129   :  { %2311 = vmatprep.subr.bf16.mxu1 %v4636_v59  ;;  %v371_v59 = vsub.s32 3, %v5098_v14  ;;  %v4784_v14 = vld [vmem:[#allocation12 + $0x30] sm:$0xff]  }
 0x12b   :  { %2271 = vmatpush2.bf16.msra.mxu0 %v4538_v48  ;;  %v4595_v48 = vld [vmem:[#allocation9 + $0x1c8] ss:$16 sps:$4 sm:$0xff]  }
 0x12c   :  { %2322 = vmatprep.subr.bf16.mxu0 %v4543_v50  ;;  %2312 = vmatpush2.bf16.msra.mxu1 %v4634_v60  ;;  %v4601_v50 = vld [vmem:[#allocation9 + $0x1a8] ss:$16 sps:$4 sm:$0xff]   ;;  %v368_v60 = vrot.slane %v5103_v9, %v367_v56 }
 0x12d   :  { %2363 = vmatprep.subr.bf16.mxu1 %v4639_v61  ;;  %v4619_v61 = vld [vmem:[#allocation9 + $0x148] ss:$16 sps:$4 sm:$0xff]  }
 0x14e   :  { %v1229_v62 = vpop.f32.mrf.mxu0 }
 0x14f   :  { %v1270_v0 = vpop.f32.mrf.mxu1  ;;  %v1230_v12 = vadd.f32 %v1229_v62, %v360_v54  ;;  %v4627_v62 = vld [vmem:[#allocation9 + $0x12c] ss:$16 sps:$4 sm:$0xff]  }
 0x150   :  { %v1231_v2 = vpop.f32.mrf.mxu0 }
 0x151   :  { %v1272_v3 = vpop.f32.mrf.mxu1  ;;  %v1232_v15 = vadd.f32 %v1231_v2, %v364_v11  ;;  %v1271_v16 = vadd.f32 %v1270_v0, %v1230_v12  ;;  %v372_v0 = vrot.slane %v5103_v9, %v371_v59 }
 0x152   :  { %v1233_v4 = vpop.f32.mrf.mxu0 }
 0x153   :  { %v1274_v6 = vpop.f32.mrf.mxu1  ;;  %v1273_v63 = vadd.f32 %v1272_v3, %v1232_v15  ;;  %v4625_v3 = vld [vmem:[#allocation9 + $0x128] ss:$16 sps:$4 sm:$0xff]  }
 0x154   :  { %v1234_v7 = vpop.f32.mrf.mxu0 }
 0x155   :  { %v1275_v8 = vpop.f32.mrf.mxu1  ;;  %v4633_v7 = vld [vmem:[#allocation9 + $0x10c] ss:$16 sps:$4 sm:$0xff]  }
 0x16e   :  { %v1311_v17 = vpop.f32.mrf.mxu0 }
 0x16f   :  { %v1312_v18 = vadd.f32 %v1311_v17, %v1271_v16  ;;  %v4631_v17 = vld [vmem:[#allocation9 + $0x108] ss:$16 sps:$4 sm:$0xff]  }
 0x170   :  { %v1313_v19 = vpop.f32.mrf.mxu0 }
 0x171   :  { %v1314_v20 = vadd.f32 %v1313_v19, %v1273_v63  ;;  %v1441_v21 = vmax.f32 %v1312_v18, 0.0 }
 0x172   :  { %v1315_v22 = vpop.f32.mrf.mxu0 }
 0x173   :  { %v1442_v23 = vmax.f32 %v1314_v20, 0.0  ;;  %v5112_v29 = vpack.c.bf16 %v1441_v21, %v1441_v21 }
 0x174   :  { %v1316_v24 = vpop.f32.mrf.mxu0 }
 0x175   :  { %v1576_v25 = vpack.c.bf16 %v1442_v23, %v1442_v23  ;;  %v4637_v24 = vld [vmem:[#allocation9 + $0x2e8] ss:$16 sps:$4 sm:$0xff]  }
 0x177   :  { %2272 = vmatprep.mubr.bf16.mxu0 %v1576_v25 }
 0x178   :  { %2273 = vmatmul.mubr.bf16.vlgmr.msra.gmra.mxu0 %v5112_v29 }
 0x179   :  { %2323 = vmatpush1.bf16.msra.mxu0 %v4541_v27  ;;  %2354 = vmatprep.mubr.bf16.mxu0 %v1576_v25  ;;  %v4642_v27 = vld [vmem:[#allocation9 + $0x2cc] ss:$16 sps:$4 sm:$0xff]  }
 0x17a   :  { %2324 = vmatprep.subr.bf16.mxu0 %v4549_v30  ;;  %v4640_v30 = vld [vmem:[#allocation9 + $0x2c8] ss:$16 sps:$4 sm:$0xff]  }
 0x17d   :  { %2325 = vmatpush1.bf16.msra.mxu0 %v4547_v31  ;;  %v4645_v31 = vld [vmem:[#allocation9 + $0x2ac] ss:$16 sps:$4 sm:$0xff]  }
 0x17e   :  { %2326 = vmatprep.subr.bf16.mxu0 %v4555_v1  ;;  %v4685_v1 = vld [vmem:[#allocation11 + $0x70] ss:$8 sps:$4 sm:$0xff]  }
 0x181   :  { %2327 = vmatpush1.bf16.msra.mxu0 %v4553_v32  ;;  %v4687_v32 = vld [vmem:[#allocation11 + $0x74] ss:$8 sps:$4 sm:$0xff]  }
 0x182   :  { %2328 = vmatprep.subr.bf16.mxu0 %v4561_v33  ;;  %v4643_v33 = vld [vmem:[#allocation9 + $0x2a8] ss:$16 sps:$4 sm:$0xff]  }
 0x185   :  { %2329 = vmatpush1.bf16.msra.mxu0 %v4559_v34  ;;  %v4690_v34 = vld [vmem:[#allocation11 + $0x64] ss:$8 sps:$4 sm:$0xff]  }
 0x186   :  { %2330 = vmatprep.subr.bf16.mxu0 %v4567_v35  ;;  %v4648_v35 = vld [vmem:[#allocation9 + $0x28c] ss:$16 sps:$4 sm:$0xff]  }
 0x189   :  { %2331 = vmatpush1.bf16.msra.mxu0 %v4565_v36  ;;  %v4688_v36 = vld [vmem:[#allocation11 + $0x60] ss:$8 sps:$4 sm:$0xff]  }
 0x18a   :  { %2332 = vmatprep.subr.bf16.mxu0 %v4573_v37  ;;  %v4646_v37 = vld [vmem:[#allocation9 + $0x288] ss:$16 sps:$4 sm:$0xff]  }
 0x18d   :  { %2333 = vmatpush1.bf16.msra.mxu0 %v4571_v38  ;;  %v4651_v38 = vld [vmem:[#allocation9 + $0x26c] ss:$16 sps:$4 sm:$0xff]  }
 0x18e   :  { %2334 = vmatprep.subr.bf16.mxu0 %v4579_v39  ;;  %v4691_v39 = vld [vmem:[#allocation11 + $0x50] ss:$8 sps:$4 sm:$0xff]  }
 0x18f   :  { %v1352_v40 = vpop.f32.mrf.mxu1 }
 0x190   :  { %v1353_v2 = vadd.f32 %v1352_v40, %v368_v60  ;;  %v4649_v40 = vld [vmem:[#allocation9 + $0x268] ss:$16 sps:$4 sm:$0xff]   ;;  %v4666_v60 = vld [vmem:[#allocation9 + $0x3cc] ss:$16 sps:$4 sm:$0xff]  }
 0x191   :  { %v1354_v42 = vpop.f32.mrf.mxu1  ;;  %2335 = vmatpush1.bf16.msra.mxu0 %v4577_v13  ;;  %v4696_v13 = vld [vmem:[#allocation11 + $0x44] ss:$8 sps:$4 sm:$0xff]  }
 0x192   :  { %2336 = vmatprep.subr.bf16.mxu0 %v4585_v41  ;;  %v1355_v8 = vadd.f32 %v1354_v42, %v372_v0  ;;  %v4654_v41 = vld [vmem:[#allocation9 + $0x24c] ss:$16 sps:$4 sm:$0xff]   ;;  %v4694_v42 = vld [vmem:[#allocation11 + $0x40] ss:$8 sps:$4 sm:$0xff]  }
 0x193   :  { %v1356_v44 = vpop.f32.mrf.mxu1  ;;  %v4664_v0 = vld [vmem:[#allocation9 + $0x3c8] ss:$16 sps:$4 sm:$0xff]  }
 0x194   :  { %v4652_v44 = vld [vmem:[#allocation9 + $0x248] ss:$16 sps:$4 sm:$0xff]  }
 0x195   :  { %v1357_v28 = vpop.f32.mrf.mxu1  ;;  %2337 = vmatpush1.bf16.msra.mxu0 %v4583_v43  ;;  %v4699_v43 = vld [vmem:[#allocation11 + $0x34] ss:$8 sps:$4 sm:$0xff]  }
 0x196   :  { %2338 = vmatprep.subr.bf16.mxu0 %v4591_v45  ;;  %v4657_v45 = vld [vmem:[#allocation9 + $0x22c] ss:$16 sps:$4 sm:$0xff]   ;;  %v4697_v28 = vld [vmem:[#allocation11 + $0x30] ss:$8 sps:$4 sm:$0xff]  }
 0x199   :  { %2339 = vmatpush2.bf16.msra.mxu0 %v4589_v46  ;;  %v4702_v46 = vld [vmem:[#allocation11 + $0x24] ss:$8 sps:$4 sm:$0xff]  }
 0x19a   :  { %2340 = vmatprep.subr.bf16.mxu0 %v4597_v47  ;;  %v4655_v47 = vld [vmem:[#allocation9 + $0x228] ss:$16 sps:$4 sm:$0xff]  }
 0x19d   :  { %2341 = vmatpush2.bf16.msra.mxu0 %v4595_v48  ;;  %v4660_v48 = vld [vmem:[#allocation9 + $0x20c] ss:$16 sps:$4 sm:$0xff]  }
 0x19e   :  { %2342 = vmatprep.subr.bf16.mxu0 %v4603_v49  ;;  %v4700_v49 = vld [vmem:[#allocation11 + $0x20] ss:$8 sps:$4 sm:$0xff]  }
 0x1a1   :  { %2343 = vmatpush2.bf16.msra.mxu0 %v4601_v50  ;;  %v4705_v50 = vld [vmem:[#allocation11 + $0x14] ss:$8 sps:$4 sm:$0xff]  }
 0x1a2   :  { %2344 = vmatprep.subr.bf16.mxu0 %v4609_v51  ;;  %v4658_v51 = vld [vmem:[#allocation9 + $0x208] ss:$16 sps:$4 sm:$0xff]  }
 0x1a5   :  { %2345 = vmatpush2.bf16.msra.mxu0 %v4607_v52  ;;  %v4663_v52 = vld [vmem:[#allocation9 + $0x3ec] ss:$16 sps:$4 sm:$0xff]  }
 0x1a6   :  { %2346 = vmatprep.subr.bf16.mxu0 %v4615_v55  ;;  %v4703_v55 = vld [vmem:[#allocation11 + $0x10] ss:$8 sps:$4 sm:$0xff]  }
 0x1a9   :  { %2347 = vmatpush2.bf16.msra.mxu0 %v4613_v57  ;;  %v4708_v57 = vld [vmem:[#allocation11 + $0x4] ss:$8 sps:$4 sm:$0xff]  }
 0x1aa   :  { %2348 = vmatprep.subr.bf16.mxu0 %v4621_v58  ;;  %v4661_v58 = vld [vmem:[#allocation9 + $0x3e8] ss:$16 sps:$4 sm:$0xff]  }
 0x1ad   :  { %2349 = vmatpush2.bf16.msra.mxu0 %v4619_v61  ;;  %v4706_v61 = vld [vmem:[#allocation11] ss:$8 sps:$4 sm:$0xff]  }
 0x1ae   :  { %v1393_v4 = vpop.f32.mrf.mxu0  ;;  %2350 = vmatprep.subr.bf16.mxu0 %v4627_v62  ;;  %v4711_v62 = vld [vmem:[#allocation11 + $0xf4] ss:$8 sps:$4 sm:$0xff]  }
 0x1af   :  { %v1434_v6 = vpop.f32.mrf.mxu1  ;;  %v1394_v54 = vadd.f32 %v1393_v4, %v1353_v2  ;;  %v4669_v2 = vld [vmem:[#allocation9 + $0x3ac] ss:$16 sps:$4 sm:$0xff]  }
 0x1b0   :  { %v1395_v11 = vpop.f32.mrf.mxu0  ;;  %v4714_v4 = vld [vmem:[#allocation11 + $0xe4] ss:$8 sps:$4 sm:$0xff]  }
 0x1b1   :  { %v1436_v12 = vpop.f32.mrf.mxu1  ;;  %v1435_v15 = vadd.f32 %v1434_v6, %v1394_v54  ;;  %v1396_v16 = vadd.f32 %v1395_v11, %v1355_v8  ;;  %2351 = vmatpush2.bf16.msra.mxu0 %v4625_v3  ;;  %v4709_v3 = vld [vmem:[#allocation11 + $0xf0] ss:$8 sps:$4 sm:$0xff]   ;;  %v4712_v8 = vld [vmem:[#allocation11 + $0xe0] ss:$8 sps:$4 sm:$0xff]   ;;  %v4717_v54 = vld [vmem:[#allocation11 + $0xd4] ss:$8 sps:$4 sm:$0xff]  }
 0x1b2   :  { %v1397_v63 = vpop.f32.mrf.mxu0  ;;  %2352 = vmatprep.subr.bf16.mxu0 %v4633_v7  ;;  %v4667_v6 = vld [vmem:[#allocation9 + $0x3a8] ss:$16 sps:$4 sm:$0xff]   ;;  %v4672_v7 = vld [vmem:[#allocation9 + $0x38c] ss:$16 sps:$4 sm:$0xff]  }
 0x1b3   :  { %v1438_v18 = vpop.f32.mrf.mxu1  ;;  %v1437_v19 = vadd.f32 %v1436_v12, %v1396_v16  ;;  %v1443_v9 = vmax.f32 %v1435_v15, 0.0  ;;  %v4670_v11 = vld [vmem:[#allocation9 + $0x388] ss:$16 sps:$4 sm:$0xff]   ;;  %v4675_v12 = vld [vmem:[#allocation9 + $0x36c] ss:$16 sps:$4 sm:$0xff]  }
 0x1b4   :  { %v1398_v20 = vpop.f32.mrf.mxu0  ;;  %v4715_v15 = vld [vmem:[#allocation11 + $0xd0] ss:$8 sps:$4 sm:$0xff]   ;;  %v4720_v16 = vld [vmem:[#allocation11 + $0xc4] ss:$8 sps:$4 sm:$0xff]   ;;  %v4718_v18 = vld [vmem:[#allocation11 + $0xc0] ss:$8 sps:$4 sm:$0xff]  }
 0x1b5   :  { %v1439_v21 = vpop.f32.mrf.mxu1  ;;  %v1444_v22 = vmax.f32 %v1437_v19, 0.0  ;;  %2353 = vmatpush2.bf16.msra.mxu0 %v4631_v17  ;;  %v5123_v25 = vpack.c.bf16 %v1443_v9, %v1443_v9  ;;  %v4673_v17 = vld [vmem:[#allocation9 + $0x368] ss:$16 sps:$4 sm:$0xff]   ;;  %v4678_v63 = vld [vmem:[#allocation9 + $0x34c] ss:$16 sps:$4 sm:$0xff]  }
 0x1b6   :  { %2809 = vmatprep.subr.bf16.mxu0 %v4687_v32  ;;  %v4723_v19 = vld [vmem:[#allocation11 + $0xb4] ss:$8 sps:$4 sm:$0xff]   ;;  %v4676_v9 = vld [vmem:[#allocation9 + $0x348] ss:$16 sps:$4 sm:$0xff]   ;;  %v4732_v32 = vld [vmem:[#allocation11 + $0x84] ss:$8 sps:$4 sm:$0xff]  }
 0x1b7   :  { %v1578_v23 = vpack.c.bf16 %v1444_v22, %v1444_v22  ;;  %v4681_v20 = vld [vmem:[#allocation9 + $0x32c] ss:$16 sps:$4 sm:$0xff]   ;;  %v4721_v21 = vld [vmem:[#allocation11 + $0xb0] ss:$8 sps:$4 sm:$0xff]  }
 0x1b8   :  { %2355 = vmatmul.mubr.bf16.vlgmr.msra.gmra.mxu0 %v5112_v29  ;;  %v4693_v29 = vld [vmem:[#allocation11 + $0x54] ss:$8 sps:$4 sm:$0xff]   ;;  %v4679_v22 = vld [vmem:[#allocation9 + $0x328] ss:$16 sps:$4 sm:$0xff]  }
 0x1b9   :  { %2313 = vmatprep.mubr.bf16.mxu1 %v1578_v23  ;;  %2810 = vmatpush1.bf16.msra.mxu0 %v4685_v1  ;;  %v4727_v1 = vld [vmem:[#allocation11 + $0x90] ss:$8 sps:$4 sm:$0xff]  }
 0x1ba   :  { %2314 = vmatmul.mubr.bf16.vlgmr.msra.gmra.mxu1 %v5123_v25  ;;  %2811 = vmatprep.subr.bf16.mxu0 %v4690_v34  ;;  %v4735_v34 = vld [vmem:[#allocation11 + $0x174] ss:$8 sps:$4 sm:$0xff]  }
 0x1bb   :  { %2364 = vmatpush1.bf16.msra.mxu1 %v4637_v24  ;;  %2395 = vmatprep.mubr.bf16.mxu1 %v1578_v23  ;;  %v4684_v23 = vld [vmem:[#allocation9 + $0x30c] ss:$16 sps:$4 sm:$0xff]   ;;  %v4682_v24 = vld [vmem:[#allocation9 + $0x308] ss:$16 sps:$4 sm:$0xff]  }
 0x1bc   :  { %2365 = vmatprep.subr.bf16.mxu1 %v4642_v27  ;;  %v4726_v27 = vld [vmem:[#allocation11 + $0xa4] ss:$8 sps:$4 sm:$0xff]  }
 0x1bd   :  { %2812 = vmatpush1.bf16.msra.mxu0 %v4688_v36  ;;  %v4738_v36 = vld [vmem:[#allocation11 + $0x164] ss:$8 sps:$4 sm:$0xff]  }
 0x1be   :  { %2813 = vmatprep.subr.bf16.mxu0 %v4693_v29  ;;  %v4736_v29 = vld [vmem:[#allocation11 + $0x160] ss:$8 sps:$4 sm:$0xff]  }
 0x1bf   :  { %2366 = vmatpush1.bf16.msra.mxu1 %v4640_v30  ;;  %v4724_v30 = vld [vmem:[#allocation11 + $0xa0] ss:$8 sps:$4 sm:$0xff]  }
 0x1c0   :  { %2367 = vmatprep.subr.bf16.mxu1 %v4645_v31  ;;  %v4729_v31 = vld [vmem:[#allocation11 + $0x94] ss:$8 sps:$4 sm:$0xff]  }
 0x1c1   :  { %2814 = vmatpush1.bf16.msra.mxu0 %v4691_v39  ;;  %v4742_v39 = vld [vmem:[#allocation11 + $0x140] ss:$8 sps:$4 sm:$0xff]  }
 0x1c2   :  { %2815 = vmatprep.subr.bf16.mxu0 %v4696_v13  ;;  %v4747_v13 = vld [vmem:[#allocation11 + $0x134] ss:$8 sps:$4 sm:$0xff]  }
 0x1c3   :  { %2368 = vmatpush1.bf16.msra.mxu1 %v4643_v33  ;;  %v4730_v33 = vld [vmem:[#allocation11 + $0x80] ss:$8 sps:$4 sm:$0xff]  }
 0x1c4   :  { %2369 = vmatprep.subr.bf16.mxu1 %v4648_v35  ;;  %v4733_v35 = vld [vmem:[#allocation11 + $0x170] ss:$8 sps:$4 sm:$0xff]  }
 0x1c5   :  { %2816 = vmatpush1.bf16.msra.mxu0 %v4694_v42  ;;  %v4748_v42 = vld [vmem:[#allocation11 + $0x120] ss:$8 sps:$4 sm:$0xff]  }
 0x1c6   :  { %2817 = vmatprep.subr.bf16.mxu0 %v4699_v43  ;;  %v4753_v43 = vld [vmem:[#allocation11 + $0x114] ss:$8 sps:$4 sm:$0xff]  }
 0x1c7   :  { %2370 = vmatpush1.bf16.msra.mxu1 %v4646_v37  ;;  %v4741_v37 = vld [vmem:[#allocation11 + $0x154] ss:$8 sps:$4 sm:$0xff]  }
 0x1c8   :  { %2371 = vmatprep.subr.bf16.mxu1 %v4651_v38  ;;  %v4739_v38 = vld [vmem:[#allocation11 + $0x150] ss:$8 sps:$4 sm:$0xff]  }
 0x1c9   :  { %2818 = vmatpush1.bf16.msra.mxu0 %v4697_v28  ;;  %v4754_v28 = vld [vmem:[#allocation11 + $0x100] ss:$8 sps:$4 sm:$0xff]  }
 0x1ca   :  { %2819 = vmatprep.subr.bf16.mxu0 %v4702_v46  ;;  %v4759_v46 = vld [vmem:[#allocation11 + $0x1f4] ss:$8 sps:$4 sm:$0xff]  }
 0x1cb   :  { %2372 = vmatpush1.bf16.msra.mxu1 %v4649_v40  ;;  %v4745_v40 = vld [vmem:[#allocation11 + $0x130] ss:$8 sps:$4 sm:$0xff]  }
 0x1cc   :  { %2373 = vmatprep.subr.bf16.mxu1 %v4654_v41  ;;  %v4750_v41 = vld [vmem:[#allocation11 + $0x124] ss:$8 sps:$4 sm:$0xff]  }
 0x1cd   :  { %2820 = vmatpush1.bf16.msra.mxu0 %v4700_v49  ;;  %v4760_v49 = vld [vmem:[#allocation11 + $0x1e0] ss:$8 sps:$4 sm:$0xff]  }
 0x1ce   :  { %2821 = vmatprep.subr.bf16.mxu0 %v4705_v50  ;;  %v4765_v50 = vld [vmem:[#allocation11 + $0x1d4] ss:$8 sps:$4 sm:$0xff]  }
 0x1cf   :  { %2374 = vmatpush1.bf16.msra.mxu1 %v4652_v44  ;;  %v4751_v44 = vld [vmem:[#allocation11 + $0x110] ss:$8 sps:$4 sm:$0xff]  }
 0x1d0   :  { %2375 = vmatprep.subr.bf16.mxu1 %v4657_v45  ;;  %v4756_v45 = vld [vmem:[#allocation11 + $0x104] ss:$8 sps:$4 sm:$0xff]  }
 0x1d1   :  { %2822 = vmatpush1.bf16.msra.mxu0 %v4703_v55  ;;  %v4766_v55 = vld [vmem:[#allocation11 + $0x1c0] ss:$8 sps:$4 sm:$0xff]  }
 0x1d2   :  { %2823 = vmatprep.subr.bf16.mxu0 %v4708_v57  ;;  %v4771_v57 = vld [vmem:[#allocation11 + $0x1b4] ss:$8 sps:$4 sm:$0xff]  }
 0x1d3   :  { %2376 = vmatpush1.bf16.msra.mxu1 %v4655_v47  ;;  %v4757_v47 = vld [vmem:[#allocation11 + $0x1f0] ss:$8 sps:$4 sm:$0xff]  }
 0x1d4   :  { %2377 = vmatprep.subr.bf16.mxu1 %v4660_v48  ;;  %v4762_v48 = vld [vmem:[#allocation11 + $0x1e4] ss:$8 sps:$4 sm:$0xff]  }
 0x1d5   :  { %2824 = vmatpush1.bf16.msra.mxu0 %v4706_v61  ;;  %v4772_v61 = vld [vmem:[#allocation11 + $0x1a0] ss:$8 sps:$4 sm:$0xff]  }
 0x1d6   :  { %2825 = vmatprep.subr.bf16.mxu0 %v4711_v62 }
 0x1d7   :  { %2378 = vmatpush1.bf16.msra.mxu1 %v4658_v51  ;;  %v4763_v51 = vld [vmem:[#allocation11 + $0x1d0] ss:$8 sps:$4 sm:$0xff]  }
 0x1d8   :  { %2379 = vmatprep.subr.bf16.mxu1 %v4663_v52  ;;  %v4768_v52 = vld [vmem:[#allocation11 + $0x1c4] ss:$8 sps:$4 sm:$0xff]  }
 0x1d9   :  { %2826 = vmatpush2.bf16.msra.mxu0 %v4709_v3  ;;  %v4775_v3 = vld [vmem:[#allocation11 + $0x190] ss:$8 sps:$4 sm:$0xff]  }
 0x1da   :  { %2827 = vmatprep.subr.bf16.mxu0 %v4714_v4 }
 0x1db   :  { %2380 = vmatpush2.bf16.msra.mxu1 %v4661_v58  ;;  %v4769_v58 = vld [vmem:[#allocation11 + $0x1b0] ss:$8 sps:$4 sm:$0xff]  }
 0x1dc   :  { %2381 = vmatprep.subr.bf16.mxu1 %v4666_v60  ;;  %v4774_v60 = vld [vmem:[#allocation11 + $0x1a4] ss:$8 sps:$4 sm:$0xff]  }
 0x1dd   :  { %2828 = vmatpush2.bf16.msra.mxu0 %v4712_v8  ;;  %v4778_v8 = vld [vmem:[#allocation11 + $0x180] ss:$8 sps:$4 sm:$0xff]  }
 0x1de   :  { %2829 = vmatprep.subr.bf16.mxu0 %v4717_v54  ;;  %v1574_v54 = vld [vmem:[#allocation15 + $0x1] ss:$8 sm:$0xf] }
 0x1df   :  { %2382 = vmatpush2.bf16.msra.mxu1 %v4664_v0 }
 0x1e0   :  { %2383 = vmatprep.subr.bf16.mxu1 %v4669_v2  ;;  %v4777_v2 = vld [vmem:[#allocation11 + $0x194] ss:$8 sps:$4 sm:$0xff]  }
 0x1e1   :  { %2830 = vmatpush2.bf16.msra.mxu0 %v4715_v15 }
 0x1e2   :  { %2831 = vmatprep.subr.bf16.mxu0 %v4720_v16 }
 0x1e3   :  { %2384 = vmatpush2.bf16.msra.mxu1 %v4667_v6 }
 0x1e4   :  { %2385 = vmatprep.subr.bf16.mxu1 %v4672_v7  ;;  %v4780_v7 = vld [vmem:[#allocation11 + $0x184] ss:$8 sps:$4 sm:$0xff]  }
 0x1e5   :  { %2832 = vmatpush2.bf16.msra.mxu0 %v4718_v18 }
 0x1e6   :  { %2833 = vmatprep.subr.bf16.mxu0 %v4723_v19 }
 0x1e7   :  { %2386 = vmatpush2.bf16.msra.mxu1 %v4670_v11  ;;  %v1583_v11 = vrot.slane %v1574_v54, %v5101_v53 }
 0x1e8   :  { %2387 = vmatprep.subr.bf16.mxu1 %v4675_v12  ;;  %v1587_v12 = vrot.slane %v1574_v54, %v5106_v10 }
 0x1e9   :  { %2834 = vmatpush2.bf16.msra.mxu0 %v4721_v21 }
 0x1ea   :  { %2835 = vmatprep.subr.bf16.mxu0 %v4726_v27 }
 0x1eb   :  { %2388 = vmatpush2.bf16.msra.mxu1 %v4673_v17 }
 0x1ec   :  { %2389 = vmatprep.subr.bf16.mxu1 %v4678_v63 }
 0x1ed   :  { %2836 = vmatpush2.bf16.msra.mxu0 %v4724_v30 }
 0x1ee   :  { %2837 = vmatprep.subr.bf16.mxu0 %v4729_v31 }
 0x1ef   :  { %2390 = vmatpush2.bf16.msra.mxu1 %v4676_v9 }
 0x1f0   :  { %2391 = vmatprep.subr.bf16.mxu1 %v4681_v20 }
 0x1f1   :  { %2838 = vmatpush2.bf16.msra.mxu0 %v4727_v1 }
 0x1f2   :  { %2839 = vmatprep.subr.bf16.mxu0 %v4732_v32  ;;  %v1591_v32 = vrot.slane %v1574_v54, %v367_v56  ;;  %v4783_v56 = vld [vmem:[#allocation12 + $0x70] sm:$0xff]  }
 0x1f3   :  { %2392 = vmatpush2.bf16.msra.mxu1 %v4679_v22 }
 0x1f4   :  { %2393 = vmatprep.subr.bf16.mxu1 %v4684_v23 }
 0x1f5   :  { %2840 = vmatpush2.bf16.msra.mxu0 %v4730_v33  ;;  %v1595_v33 = vrot.slane %v1574_v54, %v371_v59  ;;  %v4785_v59 = vld [vmem:[#allocation12 + $0x68] sm:$0xff]  }
 0x1f7   :  { %2394 = vmatpush2.bf16.msra.mxu1 %v4682_v24 }
 0x1f8   :  { %2850 = vmatprep.subr.bf16.mxu1 %v4735_v34 }
 0x1fa   :  { %2396 = vmatmul.mubr.bf16.vlgmr.msra.gmra.mxu1 %v5123_v25  ;;  %v4744_v25 = vld [vmem:[#allocation11 + $0x144] ss:$8 sps:$4 sm:$0xff]  }
 0x1fb   :  { %2851 = vmatpush1.bf16.msra.mxu1 %v4733_v35 }
 0x1fc   :  { %2852 = vmatprep.subr.bf16.mxu1 %v4738_v36 }
 0x1ff   :  { %2853 = vmatpush1.bf16.msra.mxu1 %v4736_v29 }
 0x200   :  { %2854 = vmatprep.subr.bf16.mxu1 %v4741_v37 }
 0x203   :  { %2855 = vmatpush1.bf16.msra.mxu1 %v4739_v38 }
 0x204   :  { %2856 = vmatprep.subr.bf16.mxu1 %v4744_v25 }
 0x207   :  { %2857 = vmatpush1.bf16.msra.mxu1 %v4742_v39 }
 0x208   :  { %2858 = vmatprep.subr.bf16.mxu1 %v4747_v13 }
 0x20b   :  { %2859 = vmatpush1.bf16.msra.mxu1 %v4745_v40 }
 0x20c   :  { %2860 = vmatprep.subr.bf16.mxu1 %v4750_v41 }
 0x20f   :  { %2861 = vmatpush1.bf16.msra.mxu1 %v4748_v42 }
 0x210   :  { %2862 = vmatprep.subr.bf16.mxu1 %v4753_v43  ;;  %v4781_v43 = vld [vmem:[#allocation12 + $0x78] sm:$0xff]  }
 0x211   :  { %4063 = vmatprep.subr.bf16.mxu0 %v4781_v43  ;;  %v4815_v43 = vld [vmem:[#allocation14 + $0xa8] sm:$0xff]  }
 0x213   :  { %2863 = vmatpush1.bf16.msra.mxu1 %v4751_v44  ;;  %v4782_v44 = vld [vmem:[#allocation12 + $0x38] sm:$0xff]  }
 0x214   :  { %2864 = vmatprep.subr.bf16.mxu1 %v4756_v45  ;;  %v4786_v45 = vld [vmem:[#allocation12 + $0x28] sm:$0xff]  }
 0x217   :  { %2865 = vmatpush1.bf16.msra.mxu1 %v4754_v28  ;;  %v4787_v28 = vld [vmem:[#allocation12 + $0x60] sm:$0xff]  }
 0x218   :  { %2866 = vmatprep.subr.bf16.mxu1 %v4759_v46  ;;  %v4788_v46 = vld [vmem:[#allocation12 + $0x20] sm:$0xff]  }
 0x21b   :  { %2867 = vmatpush2.bf16.msra.mxu1 %v4757_v47  ;;  %v4789_v47 = vld [vmem:[#allocation12 + $0x58] sm:$0xff]  }
 0x21c   :  { %2868 = vmatprep.subr.bf16.mxu1 %v4762_v48  ;;  %v4790_v48 = vld [vmem:[#allocation12 + $0x18] sm:$0xff]  }
 0x21f   :  { %2869 = vmatpush2.bf16.msra.mxu1 %v4760_v49  ;;  %v4791_v49 = vld [vmem:[#allocation12 + $0x50] sm:$0xff]  }
 0x220   :  { %2870 = vmatprep.subr.bf16.mxu1 %v4765_v50  ;;  %v4792_v50 = vld [vmem:[#allocation12 + $0x10] sm:$0xff]  }
 0x223   :  { %2871 = vmatpush2.bf16.msra.mxu1 %v4763_v51  ;;  %v4793_v51 = vld [vmem:[#allocation12 + $0x48] sm:$0xff]  }
 0x224   :  { %2872 = vmatprep.subr.bf16.mxu1 %v4768_v52  ;;  %v4794_v52 = vld [vmem:[#allocation12 + $0x8] sm:$0xff]  }
 0x227   :  { %2873 = vmatpush2.bf16.msra.mxu1 %v4766_v55  ;;  %v4795_v55 = vld [vmem:[#allocation12 + $0x40] sm:$0xff]  }
 0x228   :  { %2874 = vmatprep.subr.bf16.mxu1 %v4771_v57  ;;  %v4796_v57 = vld [vmem:[#allocation12] sm:$0xff]  }
 0x22b   :  { %2875 = vmatpush2.bf16.msra.mxu1 %v4769_v58  ;;  %v4797_v58 = vld [vmem:[#allocation14 + $0x38] sm:$0xff]  }
 0x22c   :  { %2876 = vmatprep.subr.bf16.mxu1 %v4774_v60  ;;  %v4798_v60 = vld [vmem:[#allocation14 + $0x30] sm:$0xff]  }
 0x22f   :  { %2877 = vmatpush2.bf16.msra.mxu1 %v4772_v61  ;;  %v4799_v61 = vld [vmem:[#allocation14 + $0x28] sm:$0xff]  }
 0x230   :  { %2878 = vmatprep.subr.bf16.mxu1 %v4777_v2 }
 0x233   :  { %2879 = vmatpush2.bf16.msra.mxu1 %v4775_v3 }
 0x234   :  { %2880 = vmatprep.subr.bf16.mxu1 %v4780_v7  ;;  %v2473_v7 = vld [vmem:[#allocation15 + $0x2] ss:$8 sm:$0x3] }
 0x235   :  { %v2486_v54 = vrot.slane %v2473_v7, %v5106_v10  ;;  %v4804_v10 = vld [vmem:[#allocation14] sm:$0xff]  }
 0x237   :  { %2881 = vmatpush2.bf16.msra.mxu1 %v4778_v8  ;;  %v2482_v8 = vrot.slane %v2473_v7, %v5101_v53  ;;  %v4803_v53 = vld [vmem:[#allocation14 + $0x8] sm:$0xff]  }
 0x238   :  { %v2274_v62 = vpop.f32.mrf.mxu0  ;;  %4130 = vmatprep.subr.bf16.mxu1 %v4987_v26 }
 0x239   :  { %v2275_v16 = vadd.f32 %v2274_v62, %v1583_v11  ;;  %v4800_v62 = vld [vmem:[#allocation14 + $0x20] sm:$0xff]  }
 0x23a   :  { %v2276_v0 = vpop.f32.mrf.mxu0 }
 0x23b   :  { %v2277_v18 = vadd.f32 %v2276_v0, %v1587_v12  ;;  %v4801_v0 = vld [vmem:[#allocation14 + $0x18] sm:$0xff]  }
 0x23c   :  { %v2278_v4 = vpop.f32.mrf.mxu0 }
 0x23e   :  { %v2279_v6 = vpop.f32.mrf.mxu0 }
 0x278   :  { %v2356_v15 = vpop.f32.mrf.mxu0 }
 0x279   :  { %v2357_v34 = vadd.f32 %v2356_v15, %v1591_v32  ;;  %v4810_v32 = vld [vmem:[#allocation14 + $0x50] sm:$0xff]  }
 0x27a   :  { %v2358_v17 = vpop.f32.mrf.mxu0  ;;  %v2315_v63 = vpop.f32.mrf.mxu1 }
 0x27b   :  { %v2316_v19 = vadd.f32 %v2315_v63, %v2275_v16  ;;  %v2359_v36 = vadd.f32 %v2358_v17, %v1595_v33 }
 0x27c   :  { %v2360_v9 = vpop.f32.mrf.mxu0  ;;  %v2317_v20 = vpop.f32.mrf.mxu1 }
 0x27d   :  { %v2318_v21 = vadd.f32 %v2317_v20, %v2277_v18  ;;  %v2404_v22 = vmax.f32 %v2316_v19, 0.0 }
 0x27e   :  { %v2361_v23 = vpop.f32.mrf.mxu0  ;;  %v2319_v24 = vpop.f32.mrf.mxu1 }
 0x27f   :  { %v2405_v27 = vmax.f32 %v2318_v21, 0.0  ;;  %v2474_v1 = vpack.c.bf16 %v2404_v22, %v2404_v22  ;;  %v4802_v23 = vld [vmem:[#allocation14 + $0x10] sm:$0xff]   ;;  %v4805_v24 = vld [vmem:[#allocation14 + $0x78] sm:$0xff]  }
 0x280   :  { %v2320_v30 = vpop.f32.mrf.mxu1 }
 0x281   :  { %v2475_v31 = vpack.c.bf16 %v2405_v27, %v2405_v27  ;;  %v4806_v27 = vld [vmem:[#allocation14 + $0x70] sm:$0xff]   ;;  %v4807_v30 = vld [vmem:[#allocation14 + $0x68] sm:$0xff]  }
 0x283   :  { %2841 = vmatprep.mubr.bf16.mxu0 %v2475_v31  ;;  %v4808_v31 = vld [vmem:[#allocation14 + $0x60] sm:$0xff]  }
 0x284   :  { %2842 = vmatmul.mubr.bf16.vlgmr.msra.gmra.mxu0 %v2474_v1  ;;  %v4809_v1 = vld [vmem:[#allocation14 + $0x58] sm:$0xff]  }
 0x285   :  { %4064 = vmatpush3.bf16.msra.mxu0 %v4782_v44  ;;  %v4816_v44 = vld [vmem:[#allocation14 + $0xa0] sm:$0xff]  }
 0x286   :  { %4065 = vmatprep.subr.bf16.mxu0 %v4783_v56  ;;  %v4817_v56 = vld [vmem:[#allocation14 + $0x98] sm:$0xff]  }
 0x289   :  { %4066 = vmatpush3.bf16.msra.mxu0 %v4784_v14  ;;  %v4818_v14 = vld [vmem:[#allocation14 + $0x90] sm:$0xff]  }
 0x28a   :  { %4067 = vmatprep.subr.bf16.mxu0 %v4785_v59  ;;  %v3081_v59 = vld [vmem:[#allocation15 + $0x4] ss:$0 sm:$0xff] }
 0x28d   :  { %4068 = vmatpush3.bf16.msra.mxu0 %v4786_v45 }
 0x28e   :  { %4069 = vmatprep.subr.bf16.mxu0 %v4787_v28 }
 0x291   :  { %4070 = vmatpush3.bf16.msra.mxu0 %v4788_v46 }
 0x292   :  { %4071 = vmatprep.subr.bf16.mxu0 %v4789_v47 }
 0x295   :  { %4072 = vmatpush3.bf16.msra.mxu0 %v4790_v48 }
 0x296   :  { %4073 = vmatprep.subr.bf16.mxu0 %v4791_v49 }
 0x299   :  { %4074 = vmatpush3.bf16.msra.mxu0 %v4792_v50 }
 0x29a   :  { %4075 = vmatprep.subr.bf16.mxu0 %v4793_v51  ;;  %v4819_v51 = vld [vmem:[#allocation14 + $0x88] sm:$0xff]  }
 0x29d   :  { %4076 = vmatpush3.bf16.msra.mxu0 %v4794_v52  ;;  %v4820_v52 = vld [vmem:[#allocation14 + $0x80] sm:$0xff]  }
 0x29e   :  { %4077 = vmatprep.subr.bf16.mxu0 %v4795_v55  ;;  %v4821_v55 = vld [vmem:[#allocation14 + $0xf8] sm:$0xff]  }
 0x2a1   :  { %4078 = vmatpush3.bf16.msra.mxu0 %v4796_v57  ;;  %v4822_v57 = vld [vmem:[#allocation14 + $0xf0] sm:$0xff]  }
 0x2a2   :  { %4150 = vmatprep.subr.bf16.mxu0 %v4987_v26 }
 0x2ba   :  { %v2397_v35 = vpop.f32.mrf.mxu1 }
 0x2bb   :  { %v2398_v29 = vadd.f32 %v2397_v35, %v2357_v34  ;;  %v2925_v34 = vld [vmem:[#allocation15 + $0x3] ss:$0 sm:$0xff] }
 0x2bc   :  { %v2399_v37 = vpop.f32.mrf.mxu1 }
 0x2bd   :  { %v2400_v38 = vadd.f32 %v2399_v37, %v2359_v36  ;;  %v2406_v25 = vmax.f32 %v2398_v29, 0.0 }
 0x2be   :  { %v2401_v39 = vpop.f32.mrf.mxu1 }
 0x2bf   :  { %v2407_v13 = vmax.f32 %v2400_v38, 0.0  ;;  %v2476_v42 = vpack.c.bf16 %v2406_v25, %v2406_v25 }
 0x2c0   :  { %v2402_v40 = vpop.f32.mrf.mxu1 }
 0x2c1   :  { %v2477_v41 = vpack.c.bf16 %v2407_v13, %v2407_v13  ;;  %v4811_v13 = vld [vmem:[#allocation14 + $0x48] sm:$0xff]   ;;  %v4812_v40 = vld [vmem:[#allocation14 + $0x40] sm:$0xff]  }
 0x2c3   :  { %2882 = vmatprep.mubr.bf16.mxu1 %v2477_v41  ;;  %v4813_v41 = vld [vmem:[#allocation14 + $0xb8] sm:$0xff]  }
 0x2c4   :  { %2883 = vmatmul.mubr.bf16.vlgmr.msra.gmra.mxu1 %v2476_v42  ;;  %v4814_v42 = vld [vmem:[#allocation14 + $0xb0] sm:$0xff]  }
 0x2c5   :  { %4131 = vmatpush3.bf16.msra.mxu1 %v4797_v58  ;;  %4146 = vmatprep.mubr.msk.bf16.mxu1 %vm4989_vm1, %v4987_v26  ;;  %v4823_v58 = vld [vmem:[#allocation14 + $0xe8] sm:$0xff]  }
 0x2c6   :  { %4132 = vmatprep.subr.bf16.mxu1 %v4987_v26 }
 0x2c9   :  { %4133 = vmatpush3.bf16.msra.mxu1 %v4798_v60  ;;  %v4824_v60 = vld [vmem:[#allocation14 + $0xe0] sm:$0xff]  }
 0x2ca   :  { %4134 = vmatprep.subr.bf16.mxu1 %v4987_v26 }
 0x2cd   :  { %4135 = vmatpush3.bf16.msra.mxu1 %v4799_v61  ;;  %v4825_v61 = vld [vmem:[#allocation14 + $0xd8] sm:$0xff]  }
 0x2ce   :  { %4136 = vmatprep.subr.bf16.mxu1 %v4987_v26 }
 0x2d1   :  { %4137 = vmatpush3.bf16.msra.mxu1 %v4800_v62  ;;  %v4826_v62 = vld [vmem:[#allocation14 + $0xd0] sm:$0xff]  }
 0x2d2   :  { %4138 = vmatprep.subr.bf16.mxu1 %v4987_v26 }
 0x2d5   :  { %4139 = vmatpush3.bf16.msra.mxu1 %v4801_v0  ;;  %v3188_v0 = vld [vmem:[#allocation15 + $0x5] ss:$0 sm:$0xff] }
 0x2d6   :  { %4140 = vmatprep.subr.bf16.mxu1 %v4987_v26 }
 0x2d9   :  { %4141 = vmatpush3.bf16.msra.mxu1 %v4802_v23 }
 0x2da   :  { %4142 = vmatprep.subr.bf16.mxu1 %v4987_v26 }
 0x2dd   :  { %4143 = vmatpush3.bf16.msra.mxu1 %v4803_v53 }
 0x2de   :  { %4144 = vmatprep.subr.bf16.mxu1 %v4987_v26 }
 0x2e1   :  { %4145 = vmatpush3.bf16.msra.mxu1 %v4804_v10 }
 0x2e2   :  { %4170 = vmatprep.subr.bf16.mxu1 %v4987_v26 }
 0x344   :  { %v2843_v2 = vpop.f32.mrf.mxu0 }
 0x345   :  { %v2844_v11 = vadd.f32 %v2843_v2, %v2482_v8 }
 0x346   :  { %v2845_v3 = vpop.f32.mrf.mxu0 }
 0x347   :  { %v2846_v15 = vadd.f32 %v2845_v3, %v2486_v54 }
 0x348   :  { %v2847_v4 = vpop.f32.mrf.mxu0 }
 0x34a   :  { %v2848_v6 = vpop.f32.mrf.mxu0 }
 0x384   :  { %v2884_v12 = vpop.f32.mrf.mxu1 }
 0x385   :  { %v2885_v16 = vadd.f32 %v2884_v12, %v2844_v11  ;;  %v4827_v11 = vld [vmem:[#allocation14 + $0xc8] sm:$0xff]   ;;  %v4828_v12 = vld [vmem:[#allocation14 + $0xc0] sm:$0xff]  }
 0x386   :  { %v2886_v17 = vpop.f32.mrf.mxu1 }
 0x387   :  { %v2887_v63 = vadd.f32 %v2886_v17, %v2846_v15  ;;  %v2891_v18 = vmax.f32 %v2885_v16, 0.0  ;;  %v4829_v15 = vld [vmem:[#allocation14 + $0x138] sm:$0xff]   ;;  %v4830_v16 = vld [vmem:[#allocation14 + $0x130] sm:$0xff]   ;;  %v4831_v17 = vld [vmem:[#allocation14 + $0x128] sm:$0xff]  }
 0x388   :  { %v2888_v19 = vpop.f32.mrf.mxu1 }
 0x389   :  { %v2892_v9 = vmax.f32 %v2887_v63, 0.0  ;;  %v2926_v22 = vpack.c.bf16 %v2891_v18, %v2891_v18  ;;  %v4832_v63 = vld [vmem:[#allocation14 + $0x120] sm:$0xff]   ;;  %v4833_v18 = vld [vmem:[#allocation14 + $0x118] sm:$0xff]   ;;  %v4834_v19 = vld [vmem:[#allocation14 + $0x110] sm:$0xff]  }
 0x38a   :  { %v2889_v20 = vpop.f32.mrf.mxu1 }
 0x38b   :  { %v2927_v21 = vpack.c.bf16 %v2892_v9, %v2892_v9  ;;  %v3295_v9 = vld [vmem:[#allocation15 + $0x6] ss:$0 sm:$0xff] }
 0x38d   :  { %3056 = vmatprep.mubr.bf16.mxu0 %v2927_v21 }
 0x38e   :  { %3057 = vmatmul.mubr.bf16.vlgmr.msra.gmra.mxu0 %v2926_v22 }
 0x38f   :  { %4166 = vmatprep.mubr.msk.bf16.mxu0 %vm4989_vm1, %v4987_v26  ;;  %4151 = vmatpush3.bf16.msra.mxu0 %v4805_v24 }
 0x390   :  { %4152 = vmatprep.subr.bf16.mxu0 %v4987_v26 }
 0x393   :  { %4153 = vmatpush3.bf16.msra.mxu0 %v4806_v27  ;;  %v4835_v27 = vld [vmem:[#allocation14 + $0x108] sm:$0xff]  }
 0x394   :  { %4154 = vmatprep.subr.bf16.mxu0 %v4987_v26 }
 0x397   :  { %4155 = vmatpush3.bf16.msra.mxu0 %v4807_v30  ;;  %v4836_v30 = vld [vmem:[#allocation14 + $0x100] sm:$0xff]  }
 0x398   :  { %4156 = vmatprep.subr.bf16.mxu0 %v4987_v26 }
 0x39b   :  { %4157 = vmatpush3.bf16.msra.mxu0 %v4808_v31  ;;  %v3402_v31 = vld [vmem:[#allocation15 + $0x7] ss:$0 sm:$0xff] }
 0x39c   :  { %4158 = vmatprep.subr.bf16.mxu0 %v4987_v26 }
 0x39f   :  { %4159 = vmatpush3.bf16.msra.mxu0 %v4809_v1 }
 0x3a0   :  { %4160 = vmatprep.subr.bf16.mxu0 %v4987_v26 }
 0x3a3   :  { %4161 = vmatpush3.bf16.msra.mxu0 %v4810_v32 }
 0x3a4   :  { %4162 = vmatprep.subr.bf16.mxu0 %v4987_v26 }
 0x3a7   :  { %4163 = vmatpush3.bf16.msra.mxu0 %v4811_v13 }
 0x3a8   :  { %4164 = vmatprep.subr.bf16.mxu0 %v4987_v26 }
 0x3ab   :  { %4165 = vmatpush3.bf16.msra.mxu0 %v4812_v40 }
 0x3ac   :  { %4190 = vmatprep.subr.bf16.mxu0 %v4987_v26 }
 0x44e   :  { %v4079_v33 = vpop.f32.mrf.mxu0 }
 0x450   :  { %v4080_v35 = vpop.f32.mrf.mxu0 }
 0x451   :  { %v4081_v36 = vadd.f32 %v4080_v35, %v4079_v33 }
 0x452   :  { %v4082_v29 = vpop.f32.mrf.mxu0 }
 0x453   :  { %v3059_v37 = vadd.f32 %v4081_v36, %v2925_v34 }
 0x454   :  { %v4083_v38 = vpop.f32.mrf.mxu0 }
 0x455   :  { %v3064_v25 = vmax.f32 %v3059_v37, 0.0  ;;  %v3510_v37 = vld [vmem:[#allocation15 + $0x20] ss:$0 sm:$0xff] }
 0x457   :  { %v3082_v39 = vpack.c.bf16 %v3064_v25, %v3064_v25 }
 0x459   :  { %4147 = vmatmul.mubr.bf16.vlgmr.msra.gmra.mxu1 %v3082_v39 }
 0x45a   :  { %4186 = vmatprep.mubr.msk.bf16.mxu1 %vm4989_vm1, %v4987_v26  ;;  %4171 = vmatpush3.bf16.msra.mxu1 %v4813_v41 }
 0x45b   :  { %4172 = vmatprep.subr.bf16.mxu1 %v4987_v26 }
 0x45e   :  { %4173 = vmatpush3.bf16.msra.mxu1 %v4814_v42 }
 0x45f   :  { %4174 = vmatprep.subr.bf16.mxu1 %v4987_v26 }
 0x462   :  { %4175 = vmatpush3.bf16.msra.mxu1 %v4815_v43 }
 0x463   :  { %4176 = vmatprep.subr.bf16.mxu1 %v4987_v26 }
 0x466   :  { %4177 = vmatpush3.bf16.msra.mxu1 %v4816_v44 }
 0x467   :  { %4178 = vmatprep.subr.bf16.mxu1 %v4987_v26 }
 0x46a   :  { %4179 = vmatpush3.bf16.msra.mxu1 %v4817_v56 }
 0x46b   :  { %4180 = vmatprep.subr.bf16.mxu1 %v4987_v26 }
 0x46e   :  { %4181 = vmatpush3.bf16.msra.mxu1 %v4818_v14 }
 0x46f   :  { %4182 = vmatprep.subr.bf16.mxu1 %v4987_v26 }
 0x472   :  { %4183 = vmatpush3.bf16.msra.mxu1 %v4819_v51 }
 0x473   :  { %4184 = vmatprep.subr.bf16.mxu1 %v4987_v26 }
 0x476   :  { %4185 = vmatpush3.bf16.msra.mxu1 %v4820_v52 }
 0x477   :  { %4210 = vmatprep.subr.bf16.mxu1 %v4987_v26 }
 0x519   :  { %v3165_v45 = vpop.f32.mrf.mxu1 }
 0x51a   :  { %v3166_v28 = vadd.f32 %v3165_v45, %v3081_v59 }
 0x51b   :  { %v4148_v46 = vpop.f32.mrf.mxu1 }
 0x51c   :  { %v3171_v47 = vmax.f32 %v3166_v28, 0.0 }
 0x51d   :  { %v3168_v48 = vpop.f32.mrf.mxu1 }
 0x51e   :  { %v3189_v49 = vpack.c.bf16 %v3171_v47, %v3171_v47 }
 0x51f   :  { %v4149_v50 = vpop.f32.mrf.mxu1 }
 0x520   :  { %4167 = vmatmul.mubr.bf16.vlgmr.msra.gmra.mxu0 %v3189_v49 }
 0x521   :  { %4206 = vmatprep.mubr.msk.bf16.mxu0 %vm4989_vm1, %v4987_v26  ;;  %4191 = vmatpush3.bf16.msra.mxu0 %v4821_v55 }
 0x522   :  { %4192 = vmatprep.subr.bf16.mxu0 %v4987_v26 }
 0x525   :  { %4193 = vmatpush3.bf16.msra.mxu0 %v4822_v57 }
 0x526   :  { %4194 = vmatprep.subr.bf16.mxu0 %v4987_v26 }
 0x529   :  { %4195 = vmatpush3.bf16.msra.mxu0 %v4823_v58 }
 0x52a   :  { %4196 = vmatprep.subr.bf16.mxu0 %v4987_v26 }
 0x52d   :  { %4197 = vmatpush3.bf16.msra.mxu0 %v4824_v60 }
 0x52e   :  { %4198 = vmatprep.subr.bf16.mxu0 %v4987_v26 }
 0x531   :  { %4199 = vmatpush3.bf16.msra.mxu0 %v4825_v61 }
 0x532   :  { %4200 = vmatprep.subr.bf16.mxu0 %v4987_v26 }
 0x535   :  { %4201 = vmatpush3.bf16.msra.mxu0 %v4826_v62 }
 0x536   :  { %4202 = vmatprep.subr.bf16.mxu0 %v4987_v26 }
 0x539   :  { %4203 = vmatpush3.bf16.msra.mxu0 %v4827_v11 }
 0x53a   :  { %4204 = vmatprep.subr.bf16.mxu0 %v4987_v26 }
 0x53d   :  { %4205 = vmatpush3.bf16.msra.mxu0 %v4828_v12 }
 0x5e0   :  { %v3272_v2 = vpop.f32.mrf.mxu0 }
 0x5e1   :  { %v3273_v3 = vadd.f32 %v3272_v2, %v3188_v0 }
 0x5e2   :  { %v4168_v4 = vpop.f32.mrf.mxu0 }
 0x5e3   :  { %v3278_v6 = vmax.f32 %v3273_v3, 0.0 }
 0x5e4   :  { %v3275_v7 = vpop.f32.mrf.mxu0 }
 0x5e5   :  { %v3296_v8 = vpack.c.bf16 %v3278_v6, %v3278_v6 }
 0x5e6   :  { %v4169_v54 = vpop.f32.mrf.mxu0 }
 0x5e7   :  { %4187 = vmatmul.mubr.bf16.vlgmr.msra.gmra.mxu1 %v3296_v8 }
 0x5e8   :  { %4226 = vmatprep.mubr.msk.bf16.mxu1 %vm4989_vm1, %v4987_v26  ;;  %4211 = vmatpush3.bf16.msra.mxu1 %v4829_v15 }
 0x5e9   :  { %4212 = vmatprep.subr.bf16.mxu1 %v4987_v26 }
 0x5ec   :  { %4213 = vmatpush3.bf16.msra.mxu1 %v4830_v16 }
 0x5ed   :  { %4214 = vmatprep.subr.bf16.mxu1 %v4987_v26 }
 0x5f0   :  { %4215 = vmatpush3.bf16.msra.mxu1 %v4831_v17 }
 0x5f1   :  { %4216 = vmatprep.subr.bf16.mxu1 %v4987_v26 }
 0x5f4   :  { %4217 = vmatpush3.bf16.msra.mxu1 %v4832_v63 }
 0x5f5   :  { %4218 = vmatprep.subr.bf16.mxu1 %v4987_v26 }
 0x5f8   :  { %4219 = vmatpush3.bf16.msra.mxu1 %v4833_v18 }
 0x5f9   :  { %4220 = vmatprep.subr.bf16.mxu1 %v4987_v26 }
 0x5fc   :  { %4221 = vmatpush3.bf16.msra.mxu1 %v4834_v19 }
 0x5fd   :  { %4222 = vmatprep.subr.bf16.mxu1 %v4987_v26 }
 0x600   :  { %4223 = vmatpush3.bf16.msra.mxu1 %v4835_v27 }
 0x601   :  { %4224 = vmatprep.subr.bf16.mxu1 %v4987_v26 }
 0x604   :  { %4225 = vmatpush3.bf16.msra.mxu1 %v4836_v30 }
 0x6a7   :  { %v3379_v20 = vpop.f32.mrf.mxu1 }
 0x6a8   :  { %v3380_v21 = vadd.f32 %v3379_v20, %v3295_v9 }
 0x6a9   :  { %v4188_v22 = vpop.f32.mrf.mxu1 }
 0x6aa   :  { %v3385_v23 = vmax.f32 %v3380_v21, 0.0 }
 0x6ab   :  { %v3382_v53 = vpop.f32.mrf.mxu1 }
 0x6ac   :  { %v3403_v10 = vpack.c.bf16 %v3385_v23, %v3385_v23 }
 0x6ad   :  { %v4189_v24 = vpop.f32.mrf.mxu1 }
 0x6ae   :  { %4207 = vmatmul.mubr.bf16.vlgmr.msra.gmra.mxu0 %v3403_v10 }
 0x76e   :  { %v3486_v1 = vpop.f32.mrf.mxu0 }
 0x76f   :  { %v3487_v32 = vadd.f32 %v3486_v1, %v3402_v31 }
 0x770   :  { %v4208_v33 = vpop.f32.mrf.mxu0 }
 0x771   :  { %v3492_v34 = vmax.f32 %v3487_v32, 0.0 }
 0x772   :  { %v3489_v35 = vpop.f32.mrf.mxu0 }
 0x773   :  { %v3509_v36 = vpack.c.bf16 %v3492_v34, %v3492_v34 }
 0x774   :  { %v4209_v29 = vpop.f32.mrf.mxu0 }
 0x775   :  { %4227 = vmatmul.mubr.bf16.vlgmr.msra.gmra.mxu1 %v3509_v36 }
 0x835   :  { %v3593_v38 = vpop.f32.mrf.mxu1 }
 0x836   :  { %v3594_v25 = vadd.f32 %v3593_v38, %v3510_v37 }
 0x837   :  { %v4228_v39 = vpop.f32.mrf.mxu1 }
 0x838   :  { %v3602_v13 = vsel %vm3601_vm2, %v3594_v25, -1e+30 }
 0x839   :  { %3603 = vmax.xlane.f32.xlu0 %v3602_v13  ;;  %v3596_v26 = vpop.f32.mrf.mxu1 }
 0x83b   :  { %v4229_v40 = vpop.f32.mrf.mxu1 }
 0x8c2   :  { %v3604_v41 = vpop.xlane.xlu0 %3603 }
 0x8c3   :  { %v3605_v42 = vsub.f32 %v3602_v13, %v3604_v41 }
 0x8c5   :  { %v3606_v43 = vmul.f32 1.442695, %v3605_v42 }
 0x8c7   :  { %4837 = vpow2.f32 %v3606_v43 }
 0x8d4   :  { %v4838_v44 = vpop.eup %4837 }
 0x8d5   :  { %v3624_v56 = vsel %vm3623_vm6, %v4838_v44, 0.0  ;;  %v3618_v14 = vsel %vm3617_vm7, %v4838_v44, 0.0  ;;  %v3611_v59 = vsel %vm3608_vm8, %v4838_v44, 0.0 }
 0x8d6   :  { %3625 = vadd.xlane.f32.xlu1 %v3624_v56  ;;  %3619 = vadd.xlane.f32.xlu0 %v3618_v14 }
 0x8da   :  { %3612 = vadd.xlane.f32.xlu1 %v3611_v59 }
 0x95f   :  { %v3626_v45 = vpop.xlane.xlu1 %3625  ;;  %v3620_v28 = vpop.xlane.xlu0 %3619 }
 0x960   :  { %4839 = vrcp.f32 %v3626_v45 }
 0x961   :  { %4841 = vrcp.f32 %v3620_v28 }
 0x963   :  { %v3613_v46 = vpop.xlane.xlu1 %3612 }
 0x964   :  { %4843 = vrcp.f32 %v3613_v46 }
 0x96d   :  { %v4840_v47 = vpop.eup %4839 }
 0x96e   :  { %v4842_v48 = vpop.eup %4841 }
 0x96f   :  { %v3628_v50 = vsel %vm3615_vm4, %v4842_v48, %v4840_v47 }
 0x971   :  { %v4844_v49 = vpop.eup %4843 }
 0x972   :  { %v3629_v51 = vsel %vm3608_vm8, %v4844_v49, %v3628_v50 }
 0x973   :  { %v3630_v52 = vmul.f32 %v4838_v44, %v3629_v51 }
 0x975   :  { %3631 = vst [vmem:[%s5206_s8] sm:$0xff] %v3630_v52 }
 0x976   :  { %3636 = vsyncpa [#allocation8], 1 }
 0x977   :  { %3637 = vsyncpa [#allocation10], 1 }
 0x978   :  { %3638 = vsyncpa [#allocation13], 1 }
 0x979   :  { %3639 = vsyncpa [#allocation16], 1 }

</bundles_post_ra>
